<compile_context>
chip_gen: v6e
topology: v6e:2x2x1
jax: 0.10.0
libtpu: 0.0.40
codegen_flags: <defaults>
</compile_context>

<pallas_src>
import functools

import numpy as np
import jax
import jax.numpy as jnp
from jax.experimental import pallas as pl
from jax.experimental.pallas import tpu as pltpu  # noqa: F401  (TPU backend)


CFG = dict(vocab=50, max_pos=16, hidden=32, n_heads=2, n_layers=2,
           intermediate=64, n_classes=3)
NPAD = 128           # lane-dense band width (one lane tile) -- keep 128 on all gens
APPROX_RECIP = True  # softmax denominator via EUP vrcp; False -> exact division


# ----------------------------------------------------------------------------
# Fused encoder kernel: embeddings-LN -> L transformer layers -> pooler -> head
# ----------------------------------------------------------------------------
def _encoder_kernel(x_ref, mask_ref,
                    emb_g_ref, emb_b_ref,
                    wqkv_ref, bqkv_ref, wo_ref, bo_ref,
                    ln1_g_ref, ln1_b_ref,
                    w1_ref, b1_ref, w2_ref, b2_ref,
                    ln2_g_ref, ln2_b_ref,
                    pool_w_ref, pool_b_ref, out_w_ref, out_b_ref,
                    logits_ref, pooled_ref,
                    *, B, S, H, nH, L, eps, out_rows):
    T = B * S
    Dh = H // nH
    scale = 1.0 / (Dh ** 0.5)

    def ln(v, g, b):   # f32 VPU/XLU math (v5e has no bf16 VPU/EUP)
        mu = jnp.mean(v, axis=-1, keepdims=True)
        var = jnp.mean((v - mu) ** 2, axis=-1, keepdims=True)
        return (v - mu) * jax.lax.rsqrt(var + eps) * g + b

    def mm(a, w):      # bf16 MXU inputs, f32 accumulation
        return jnp.dot(a.astype(jnp.bfloat16), w.astype(jnp.bfloat16),
                       preferred_element_type=jnp.float32)

    x = ln(x_ref[...], emb_g_ref[...], emb_b_ref[...])            # [T, H] f32

    # Additive mask broadcast ONCE (hoisted out of all layer/head work).
    # Group order along axis 0: [h0:(b0..), h1:(b0..)]  =>  b = g % B.
    mask_bss = jnp.broadcast_to(mask_ref[...][:, None, :], (B, S, S))
    mask_g = jnp.concatenate([mask_bss] * nH, axis=0)              # [B*nH, S, S]

    def band(t, i):    # lane-aligned 128-wide column band -> free slice
        return t[:, i * NPAD:(i + 1) * NPAD]

    for l in range(L):                                             # static unroll
        # Fused QKV projection; each (kind, head) pair owns a 128-lane band.
        qkv = mm(x, wqkv_ref[l]) + bqkv_ref[l]                     # [T, 3*nH*128]

        def gather_heads(kind):   # kind 0=Q, 1=K, 2=V  -> [B*nH, S, 128]
            return jnp.concatenate(
                [band(qkv, kind * nH + h).reshape(B, S, NPAD)      # free reshape
                 for h in range(nH)], axis=0)

        q3 = gather_heads(0)
        k3 = gather_heads(1)
        v3 = gather_heads(2)

        # All B*nH score / context matmuls collapsed into two batched MXU ops.
        # The 128-deep contraction includes only zero-padded lanes -> exact.
        s = jnp.einsum("gsd,gtd->gst",
                       q3.astype(jnp.bfloat16), k3.astype(jnp.bfloat16),
                       preferred_element_type=jnp.float32) * scale + mask_g
        s = s - jnp.max(s, axis=-1, keepdims=True)
        p = jnp.exp(s)
        den = jnp.sum(p, axis=-1, keepdims=True)
        if APPROX_RECIP:
            p = p * pl.reciprocal(den, approx=True)                # EUP slot
        else:
            p = p / den
        ctx3 = jnp.einsum("gst,gtd->gsd",
                          p.astype(jnp.bfloat16), v3.astype(jnp.bfloat16),
                          preferred_element_type=jnp.float32)      # [B*nH, S, 128]

        # Head merge: leading-axis slices + lane concat at a 128 boundary only;
        # the actual per-head mixing is folded into the padded [nH*128, H] wo.
        ctx = jnp.concatenate(
            [ctx3[h * B:(h + 1) * B].reshape(T, NPAD) for h in range(nH)],
            axis=-1)                                               # [T, nH*128]
        attn_out = mm(ctx, wo_ref[l]) + bo_ref[l]                  # [T, H]
        x = ln(x + attn_out, ln1_g_ref[l], ln1_b_ref[l])

        ff = jax.nn.gelu(mm(x, w1_ref[l]) + b1_ref[l])             # tanh-approx
        ff = mm(ff, w2_ref[l]) + b2_ref[l]
        x = ln(x + ff, ln2_g_ref[l], ln2_b_ref[l])

    # Pooler on the [CLS] rows, padded to a full 8-row sublane tile so the two
    # [out_rows, 128] output stores are unmasked.
    cls_rows = [x[b * S:b * S + 1, :] for b in range(B)]
    if out_rows > B:
        cls_rows.append(jnp.zeros((out_rows - B, H), jnp.float32))
    cls = jnp.concatenate(cls_rows, axis=0)                        # [out_rows, H]
    pooled = jnp.tanh(mm(cls, pool_w_ref[...]) + pool_b_ref[...])  # [out_rows, 128]
    # nn.Dropout(p=0.1) -> identity (eval mode).
    logits = mm(pooled, out_w_ref[...]) + out_b_ref[...]           # [out_rows, 128]

    pooled_ref[...] = pooled
    logits_ref[...] = logits


# ----------------------------------------------------------------------------
# Parameters: logical (unpadded) weights for the reference + lane-aligned
# repacked slabs for the kernel.
# ----------------------------------------------------------------------------
def init_params(key, cfg):
    H, I, L = cfg["hidden"], cfg["intermediate"], cfg["n_layers"]
    nH, NC = cfg["n_heads"], cfg["n_classes"]
    Dh = H // nH

    def nrm(k, shape, scale=0.02):
        return (scale * jax.random.normal(k, shape)).astype(jnp.float32)

    keys = iter(jax.random.split(key, 20))
    p = {
        "word_emb": nrm(next(keys), (cfg["vocab"], H)),
        "pos_emb": nrm(next(keys), (cfg["max_pos"], H)),
        "type_emb": nrm(next(keys), (2, H)),
        "emb_ln_g": jnp.ones((1, H), jnp.float32),
        "emb_ln_b": jnp.zeros((1, H), jnp.float32),
        "ln1_g": jnp.ones((L, 1, H), jnp.float32),
        "ln1_b": jnp.zeros((L, 1, H), jnp.float32),
        "ln2_g": jnp.ones((L, 1, H), jnp.float32),
        "ln2_b": jnp.zeros((L, 1, H), jnp.float32),
        "w1": nrm(next(keys), (L, H, I)).astype(jnp.bfloat16),
        "b1": jnp.zeros((L, 1, I), jnp.float32),
        "w2": nrm(next(keys), (L, I, H)).astype(jnp.bfloat16),
        "b2": jnp.zeros((L, 1, H), jnp.float32),
        "bo": jnp.zeros((L, 1, H), jnp.float32),
    }
    # Logical attention / head weights (used by the pure-JAX reference).
    wq = nrm(next(keys), (L, H, H)).astype(jnp.bfloat16)
    wk = nrm(next(keys), (L, H, H)).astype(jnp.bfloat16)
    wv = nrm(next(keys), (L, H, H)).astype(jnp.bfloat16)
    wo = nrm(next(keys), (L, H, H)).astype(jnp.bfloat16)
    bq = jnp.zeros((L, 1, H), jnp.float32)
    bk = jnp.zeros((L, 1, H), jnp.float32)
    bv = jnp.zeros((L, 1, H), jnp.float32)
    pool_w = nrm(next(keys), (H, H)).astype(jnp.bfloat16)
    pool_b = jnp.zeros((1, H), jnp.float32)
    out_w = nrm(next(keys), (H, NC)).astype(jnp.bfloat16)
    out_b = jnp.zeros((1, NC), jnp.float32)
    p.update(wq=wq, wk=wk, wv=wv, wo=wo, bq=bq, bk=bk, bv=bv,
             pool_w=pool_w, pool_b=pool_b, out_w=out_w, out_b=out_b)

    # ---- Kernel-side packed layouts (every slice lands on a 128-lane tile) --
    # QKV: each (kind, head) pair owns a 128-lane band -> [L, H, 3*nH*128].
    wqkv_pad = jnp.zeros((L, H, 3 * nH * NPAD), jnp.bfloat16)
    bqkv_pad = jnp.zeros((L, 1, 3 * nH * NPAD), jnp.float32)
    for kind, (w, b) in enumerate(((wq, bq), (wk, bk), (wv, bv))):
        for h in range(nH):
            c0 = (kind * nH + h) * NPAD
            wqkv_pad = wqkv_pad.at[:, :, c0:c0 + Dh].set(w[:, :, h * Dh:(h + 1) * Dh])
            bqkv_pad = bqkv_pad.at[:, :, c0:c0 + Dh].set(b[:, :, h * Dh:(h + 1) * Dh])
    # Output projection consumes the padded per-head context bands.
    wo_pad = jnp.zeros((L, nH * NPAD, H), jnp.bfloat16)
    for h in range(nH):
        wo_pad = wo_pad.at[:, h * NPAD:h * NPAD + Dh, :].set(wo[:, h * Dh:(h + 1) * Dh, :])
    p["wqkv_pad"] = wqkv_pad
    p["bqkv_pad"] = bqkv_pad
    p["wo_pad"] = wo_pad
    # Pooler / classifier zero-padded to lane-dense N=128.
    p["pool_w_pad"] = jnp.zeros((H, NPAD), jnp.bfloat16).at[:, :H].set(pool_w)
    p["pool_b_pad"] = jnp.zeros((1, NPAD), jnp.float32).at[:, :H].set(pool_b)
    p["out_w_pad"] = jnp.zeros((NPAD, NPAD), jnp.bfloat16).at[:H, :NC].set(out_w)
    p["out_b_pad"] = jnp.zeros((1, NPAD), jnp.float32).at[:, :NC].set(out_b)
    return p


# ----------------------------------------------------------------------------
# Forward wrapper (embedding gather is XLA glue; everything else is one kernel)
# ----------------------------------------------------------------------------
def relation_classifier_forward(params, input_ids, attention_mask, cfg):
    B, S = input_ids.shape
    H, nH, L = cfg["hidden"], cfg["n_heads"], cfg["n_layers"]
    I, NC = cfg["intermediate"], cfg["n_classes"]
    BS = B * S
    out_rows = -(-B // 8) * 8          # pad output rows to a full f32 sublane tile

    # Embeddings: word + position + token_type(=0 everywhere, matching reference).
    x = (jnp.take(params["word_emb"], input_ids, axis=0)
         + params["pos_emb"][:S][None, :, :]
         + params["type_emb"][0][None, None, :])
    x2d = x.reshape(BS, H).astype(jnp.float32)
    mask_add = (1.0 - attention_mask.astype(jnp.float32)) * -1e4   # [B, S]

    operands = (
        x2d, mask_add,
        params["emb_ln_g"], params["emb_ln_b"],
        params["wqkv_pad"], params["bqkv_pad"], params["wo_pad"], params["bo"],
        params["ln1_g"], params["ln1_b"],
        params["w1"], params["b1"], params["w2"], params["b2"],
        params["ln2_g"], params["ln2_b"],
        params["pool_w_pad"], params["pool_b_pad"],
        params["out_w_pad"], params["out_b_pad"],
    )

    flops = (L * (2 * BS * H * 3 * nH * NPAD        # padded fused QKV projection
                  + 2 * B * nH * S * S * NPAD       # batched scores
                  + 2 * B * nH * S * S * NPAD       # batched context
                  + 2 * BS * nH * NPAD * H          # output projection
                  + 4 * BS * H * I)                 # FFN (two matmuls)
             + 2 * out_rows * H * NPAD + 2 * out_rows * NPAD * NPAD)
    transcendentals = L * (B * nH * S * S + BS * I) + out_rows * NPAD
    in_bytes = sum(int(np.prod(a.shape)) * a.dtype.itemsize for a in operands)
    out_bytes = 2 * out_rows * NPAD * 4
    cost = pl.CostEstimate(flops=int(flops),
                           transcendentals=int(transcendentals),
                           bytes_accessed=int(in_bytes + out_bytes))

    kernel = functools.partial(_encoder_kernel, B=B, S=S, H=H, nH=nH, L=L,
                               eps=1e-12, out_rows=out_rows)
    # Single grid-less call: weights (~0.2 MiB) + activations (~0.1 MiB) are
    # DMA'd once and stay VMEM-resident; latency-bound, so no grid, no BlockSpec
    # pipelining depth, and no vmem_limit tuning is warranted at these shapes.
    logits_pad, pooled_pad = pl.pallas_call(
        kernel,
        out_shape=(jax.ShapeDtypeStruct((out_rows, NPAD), jnp.float32),
                   jax.ShapeDtypeStruct((out_rows, NPAD), jnp.float32)),
        cost_estimate=cost,
    )(*operands)

    return logits_pad[:B, :NC], pooled_pad[:B, :H]


# ----------------------------------------------------------------------------
# Pure-JAX reference: standard (unpadded, per-head) BERT math on the logical
# weights -- independently validates the kernel's lane-aligned packing.
# ----------------------------------------------------------------------------
def reference_forward(params, input_ids, attention_mask, cfg):
    B, S = input_ids.shape
    H, nH, L = cfg["hidden"], cfg["n_heads"], cfg["n_layers"]
    Dh = H // nH
    scale = 1.0 / (Dh ** 0.5)

    def ln(v, g, b, eps=1e-12):
        mu = v.mean(-1, keepdims=True)
        var = ((v - mu) ** 2).mean(-1, keepdims=True)
        return (v - mu) / jnp.sqrt(var + eps) * g + b

    def mm(a, w):
        return jnp.dot(a.astype(jnp.bfloat16), w.astype(jnp.bfloat16),
                       preferred_element_type=jnp.float32)

    x = (jnp.take(params["word_emb"], input_ids, axis=0)
         + params["pos_emb"][:S][None] + params["type_emb"][0][None, None])
    x = ln(x.reshape(B * S, H), params["emb_ln_g"], params["emb_ln_b"])
    mask_add = (1.0 - attention_mask.astype(jnp.float32)) * -1e4

    for l in range(L):
        q = mm(x, params["wq"][l]) + params["bq"][l]
        k = mm(x, params["wk"][l]) + params["bk"][l]
        v = mm(x, params["wv"][l]) + params["bv"][l]
        split = lambda t: t.reshape(B, S, nH, Dh).transpose(0, 2, 1, 3)
        qh, kh, vh = split(q), split(k), split(v)
        s = jnp.einsum("bhqd,bhkd->bhqk", qh.astype(jnp.bfloat16),
                       kh.astype(jnp.bfloat16),
                       preferred_element_type=jnp.float32) * scale
        s = s + mask_add[:, None, None, :]
        p = jax.nn.softmax(s, axis=-1)
        ctx = jnp.einsum("bhqk,bhkd->bhqd", p.astype(jnp.bfloat16),
                         vh.astype(jnp.bfloat16),
                         preferred_element_type=jnp.float32)
        ctx = ctx.transpose(0, 2, 1, 3).reshape(B * S, H)
        x = ln(x + mm(ctx, params["wo"][l]) + params["bo"][l],
               params["ln1_g"][l], params["ln1_b"][l])
        ff = jax.nn.gelu(mm(x, params["w1"][l]) + params["b1"][l])
        ff = mm(ff, params["w2"][l]) + params["b2"][l]
        x = ln(x + ff, params["ln2_g"][l], params["ln2_b"][l])

    cls = x.reshape(B, S, H)[:, 0, :]
    pooled = jnp.tanh(mm(cls, params["pool_w"]) + params["pool_b"])
    logits = mm(pooled, params["out_w"]) + params["out_b"]
    return logits, pooled


if __name__ == "__main__":
    key = jax.random.PRNGKey(0)
    k_param, k_ids = jax.random.split(key)

    B, S = 2, 8
    params = init_params(k_param, CFG)
    input_ids = jax.random.randint(k_ids, (B, S), 0, CFG["vocab"], dtype=jnp.int32)
    attention_mask = jnp.concatenate(
        [jnp.ones((B, S - 2), jnp.int32), jnp.zeros((B, 2), jnp.int32)], axis=1)

    fwd = jax.jit(functools.partial(relation_classifier_forward, cfg=CFG))
    logits, pooled = fwd(params, input_ids, attention_mask)
    jax.block_until_ready((logits, pooled))

    assert logits.shape == (B, CFG["n_classes"])
    assert pooled.shape == (B, CFG["hidden"])
    assert jnp.all(jnp.isfinite(logits)) and jnp.all(jnp.isfinite(pooled))

    ref_logits, ref_pooled = jax.jit(
        functools.partial(reference_forward, cfg=CFG))(params, input_ids,
                                                       attention_mask)
    assert jnp.allclose(logits, ref_logits, atol=5e-3, rtol=5e-2), \
        f"logits mismatch: {float(jnp.max(jnp.abs(logits - ref_logits)))}"
    assert jnp.allclose(pooled, ref_pooled, atol=5e-3, rtol=5e-2), \
        f"pooled mismatch: {float(jnp.max(jnp.abs(pooled - ref_pooled)))}"

    print("KERNEL_OK")
</pallas_src>

<mosaic_0001>
module attributes {stable_mosaic.version = 11 : i64} {
  func.func @_encoder_kernel(%arg0: memref<16x32xf32, #tpu.memory_space<vmem>>, %arg1: memref<2x8xf32, #tpu.memory_space<vmem>>, %arg2: memref<1x32xf32, #tpu.memory_space<vmem>>, %arg3: memref<1x32xf32, #tpu.memory_space<vmem>>, %arg4: memref<2x32x768xbf16, #tpu.memory_space<vmem>>, %arg5: memref<2x1x768xf32, #tpu.memory_space<vmem>>, %arg6: memref<2x256x32xbf16, #tpu.memory_space<vmem>>, %arg7: memref<2x1x32xf32, #tpu.memory_space<vmem>>, %arg8: memref<2x1x32xf32, #tpu.memory_space<vmem>>, %arg9: memref<2x1x32xf32, #tpu.memory_space<vmem>>, %arg10: memref<2x32x64xbf16, #tpu.memory_space<vmem>>, %arg11: memref<2x1x64xf32, #tpu.memory_space<vmem>>, %arg12: memref<2x64x32xbf16, #tpu.memory_space<vmem>>, %arg13: memref<2x1x32xf32, #tpu.memory_space<vmem>>, %arg14: memref<2x1x32xf32, #tpu.memory_space<vmem>>, %arg15: memref<2x1x32xf32, #tpu.memory_space<vmem>>, %arg16: memref<32x128xbf16, #tpu.memory_space<vmem>>, %arg17: memref<1x128xf32, #tpu.memory_space<vmem>>, %arg18: memref<128x128xbf16, #tpu.memory_space<vmem>>, %arg19: memref<1x128xf32, #tpu.memory_space<vmem>>, %arg20: memref<8x128xf32, #tpu.memory_space<vmem>>, %arg21: memref<8x128xf32, #tpu.memory_space<vmem>>) attributes {dimension_semantics = [], scalar_prefetch = 0 : i64, scratch_operands = 0 : i64, tpu.core_type = #tpu.core_type<tc>} {
    %c0 = arith.constant 0 : index
    %c0_0 = arith.constant 0 : index
    %0 = vector.load %arg0[%c0, %c0_0] : memref<16x32xf32, #tpu.memory_space<vmem>>, vector<16x32xf32>
    %c0_1 = arith.constant 0 : index
    %c0_2 = arith.constant 0 : index
    %1 = vector.load %arg2[%c0_1, %c0_2] : memref<1x32xf32, #tpu.memory_space<vmem>>, vector<1x32xf32>
    %c0_3 = arith.constant 0 : index
    %c0_4 = arith.constant 0 : index
    %2 = vector.load %arg3[%c0_3, %c0_4] : memref<1x32xf32, #tpu.memory_space<vmem>>, vector<1x32xf32>
    %cst = arith.constant dense<0.000000e+00> : vector<16xf32>
    %3 = vector.multi_reduction <add>, %0, %cst [1] : vector<16x32xf32> to vector<16xf32>
    %4 = vector.shape_cast %3 : vector<16xf32> to vector<16x1xf32>
    %cst_5 = arith.constant 3.200000e+01 : f32
    %5 = vector.broadcast %cst_5 : f32 to vector<16x1xf32>
    %6 = arith.divf %4, %5 : vector<16x1xf32>
    %7 = vector.broadcast %6 : vector<16x1xf32> to vector<16x32xf32>
    %8 = arith.subf %0, %7 : vector<16x32xf32>
    %9 = arith.mulf %8, %8 : vector<16x32xf32>
    %cst_6 = arith.constant dense<0.000000e+00> : vector<16xf32>
    %10 = vector.multi_reduction <add>, %9, %cst_6 [1] : vector<16x32xf32> to vector<16xf32>
    %11 = vector.shape_cast %10 : vector<16xf32> to vector<16x1xf32>
    %cst_7 = arith.constant 3.200000e+01 : f32
    %12 = vector.broadcast %cst_7 : f32 to vector<16x1xf32>
    %13 = arith.divf %11, %12 : vector<16x1xf32>
    %14 = vector.broadcast %6 : vector<16x1xf32> to vector<16x32xf32>
    %15 = arith.subf %0, %14 : vector<16x32xf32>
    %cst_8 = arith.constant 9.99999996E-13 : f32
    %16 = vector.broadcast %cst_8 : f32 to vector<16x1xf32>
    %17 = arith.addf %13, %16 : vector<16x1xf32>
    %18 = math.rsqrt %17 : vector<16x1xf32>
    %19 = vector.broadcast %18 : vector<16x1xf32> to vector<16x32xf32>
    %20 = arith.mulf %15, %19 : vector<16x32xf32>
    %21 = vector.broadcast %1 : vector<1x32xf32> to vector<16x32xf32>
    %22 = arith.mulf %20, %21 : vector<16x32xf32>
    %23 = vector.broadcast %2 : vector<1x32xf32> to vector<16x32xf32>
    %24 = arith.addf %22, %23 : vector<16x32xf32>
    %c0_9 = arith.constant 0 : index
    %c0_10 = arith.constant 0 : index
    %25 = vector.load %arg1[%c0_9, %c0_10] : memref<2x8xf32, #tpu.memory_space<vmem>>, vector<2x8xf32>
    %26 = vector.shape_cast %25 : vector<2x8xf32> to vector<2x1x8xf32>
    %27 = vector.shape_cast %26 : vector<2x1x8xf32> to vector<2x1x8xf32>
    %28 = vector.broadcast %27 : vector<2x1x8xf32> to vector<2x8x8xf32>
    %29 = tpu.concatenate %28, %28 in 0 : vector<2x8x8xf32>, vector<2x8x8xf32> -> vector<4x8x8xf32>
    %c0_11 = arith.constant 0 : index
    %c0_12 = arith.constant 0 : index
    %c0_13 = arith.constant 0 : index
    %30 = vector.load %arg4[%c0_11, %c0_12, %c0_13] : memref<2x32x768xbf16, #tpu.memory_space<vmem>>, vector<1x32x768xbf16>
    %31 = vector.shape_cast %30 : vector<1x32x768xbf16> to vector<32x768xbf16>
    %32 = arith.truncf %24 : vector<16x32xf32> to vector<16x32xbf16>
    %cst_14 = arith.constant dense<0.000000e+00> : vector<16x768xf32>
    %33 = tpu.matmul %32, %31, %cst_14 {dimension_numbers = #tpu.dot_dimension_numbers<[1], [0], [0], [1], [0, 0, 1, 1], [], []>} : vector<16x32xbf16>, vector<32x768xbf16>, vector<16x768xf32> -> vector<16x768xf32>
    %c0_15 = arith.constant 0 : index
    %c0_16 = arith.constant 0 : index
    %c0_17 = arith.constant 0 : index
    %34 = vector.load %arg5[%c0_15, %c0_16, %c0_17] : memref<2x1x768xf32, #tpu.memory_space<vmem>>, vector<1x1x768xf32>
    %35 = vector.shape_cast %34 : vector<1x1x768xf32> to vector<1x768xf32>
    %36 = vector.broadcast %35 : vector<1x768xf32> to vector<16x768xf32>
    %37 = arith.addf %33, %36 : vector<16x768xf32>
    %38 = vector.extract_strided_slice %37 {offsets = [0, 0], sizes = [16, 128], strides = [1, 1]} : vector<16x768xf32> to vector<16x128xf32>
    %39 = vector.shape_cast %38 : vector<16x128xf32> to vector<2x8x128xf32>
    %40 = vector.extract_strided_slice %37 {offsets = [0, 128], sizes = [16, 128], strides = [1, 1]} : vector<16x768xf32> to vector<16x128xf32>
    %41 = vector.shape_cast %40 : vector<16x128xf32> to vector<2x8x128xf32>
    %42 = tpu.concatenate %39, %41 in 0 : vector<2x8x128xf32>, vector<2x8x128xf32> -> vector<4x8x128xf32>
    %43 = vector.extract_strided_slice %37 {offsets = [0, 256], sizes = [16, 128], strides = [1, 1]} : vector<16x768xf32> to vector<16x128xf32>
    %44 = vector.shape_cast %43 : vector<16x128xf32> to vector<2x8x128xf32>
    %45 = vector.extract_strided_slice %37 {offsets = [0, 384], sizes = [16, 128], strides = [1, 1]} : vector<16x768xf32> to vector<16x128xf32>
    %46 = vector.shape_cast %45 : vector<16x128xf32> to vector<2x8x128xf32>
    %47 = tpu.concatenate %44, %46 in 0 : vector<2x8x128xf32>, vector<2x8x128xf32> -> vector<4x8x128xf32>
    %48 = vector.extract_strided_slice %37 {offsets = [0, 512], sizes = [16, 128], strides = [1, 1]} : vector<16x768xf32> to vector<16x128xf32>
    %49 = vector.shape_cast %48 : vector<16x128xf32> to vector<2x8x128xf32>
    %50 = vector.extract_strided_slice %37 {offsets = [0, 640], sizes = [16, 128], strides = [1, 1]} : vector<16x768xf32> to vector<16x128xf32>
    %51 = vector.shape_cast %50 : vector<16x128xf32> to vector<2x8x128xf32>
    %52 = tpu.concatenate %49, %51 in 0 : vector<2x8x128xf32>, vector<2x8x128xf32> -> vector<4x8x128xf32>
    %53 = arith.truncf %42 : vector<4x8x128xf32> to vector<4x8x128xbf16>
    %54 = arith.truncf %47 : vector<4x8x128xf32> to vector<4x8x128xbf16>
    "tpu.trace_start"() <{level = 10 : i32, message = "gsd,gtd->gst"}> : () -> ()
    %cst_18 = arith.constant dense<0.000000e+00> : vector<4x8x8xf32>
    %55 = tpu.matmul %53, %54, %cst_18 {dimension_numbers = #tpu.dot_dimension_numbers<[2], [2], [1], [1], [0, 0, 0, 1, 1, 1], [0], [0]>} : vector<4x8x128xbf16>, vector<4x8x128xbf16>, vector<4x8x8xf32> -> vector<4x8x8xf32>
    "tpu.trace_stop"() : () -> ()
    %cst_19 = arith.constant 2.500000e-01 : f32
    %56 = vector.broadcast %cst_19 : f32 to vector<4x8x8xf32>
    %57 = arith.mulf %55, %56 : vector<4x8x8xf32>
    %58 = arith.addf %57, %29 : vector<4x8x8xf32>
    %cst_20 = arith.constant dense<0xFF800000> : vector<4x8xf32>
    %59 = vector.multi_reduction <maximumf>, %58, %cst_20 [2] : vector<4x8x8xf32> to vector<4x8xf32>
    %60 = vector.shape_cast %59 : vector<4x8xf32> to vector<4x8x1xf32>
    %61 = vector.broadcast %60 : vector<4x8x1xf32> to vector<4x8x8xf32>
    %62 = arith.subf %58, %61 : vector<4x8x8xf32>
    %63 = math.exp %62 : vector<4x8x8xf32>
    %cst_21 = arith.constant dense<0.000000e+00> : vector<4x8xf32>
    %64 = vector.multi_reduction <add>, %63, %cst_21 [2] : vector<4x8x8xf32> to vector<4x8xf32>
    %65 = vector.shape_cast %64 : vector<4x8xf32> to vector<4x8x1xf32>
    %66 = tpu.reciprocal %65 {approx = true} : vector<4x8x1xf32> -> vector<4x8x1xf32>
    %67 = vector.broadcast %66 : vector<4x8x1xf32> to vector<4x8x8xf32>
    %68 = arith.mulf %63, %67 : vector<4x8x8xf32>
    %69 = arith.truncf %68 : vector<4x8x8xf32> to vector<4x8x8xbf16>
    %70 = arith.truncf %52 : vector<4x8x128xf32> to vector<4x8x128xbf16>
    "tpu.trace_start"() <{level = 10 : i32, message = "gst,gtd->gsd"}> : () -> ()
    %cst_22 = arith.constant dense<0.000000e+00> : vector<4x8x128xf32>
    %71 = tpu.matmul %69, %70, %cst_22 {dimension_numbers = #tpu.dot_dimension_numbers<[2], [1], [1], [2], [0, 0, 0, 1, 1, 2], [0], [0]>} : vector<4x8x8xbf16>, vector<4x8x128xbf16>, vector<4x8x128xf32> -> vector<4x8x128xf32>
    "tpu.trace_stop"() : () -> ()
    %72 = vector.extract_strided_slice %71 {offsets = [0, 0, 0], sizes = [2, 8, 128], strides = [1, 1, 1]} : vector<4x8x128xf32> to vector<2x8x128xf32>
    %73 = vector.shape_cast %72 : vector<2x8x128xf32> to vector<16x128xf32>
    %74 = vector.extract_strided_slice %71 {offsets = [2, 0, 0], sizes = [2, 8, 128], strides = [1, 1, 1]} : vector<4x8x128xf32> to vector<2x8x128xf32>
    %75 = vector.shape_cast %74 : vector<2x8x128xf32> to vector<16x128xf32>
    %76 = tpu.concatenate %73, %75 in 1 : vector<16x128xf32>, vector<16x128xf32> -> vector<16x256xf32>
    %c0_23 = arith.constant 0 : index
    %c0_24 = arith.constant 0 : index
    %c0_25 = arith.constant 0 : index
    %77 = vector.load %arg6[%c0_23, %c0_24, %c0_25] : memref<2x256x32xbf16, #tpu.memory_space<vmem>>, vector<1x256x32xbf16>
    %78 = vector.shape_cast %77 : vector<1x256x32xbf16> to vector<256x32xbf16>
    %79 = arith.truncf %76 : vector<16x256xf32> to vector<16x256xbf16>
    %cst_26 = arith.constant dense<0.000000e+00> : vector<16x32xf32>
    %80 = tpu.matmul %79, %78, %cst_26 {dimension_numbers = #tpu.dot_dimension_numbers<[1], [0], [0], [1], [0, 0, 1, 1], [], []>} : vector<16x256xbf16>, vector<256x32xbf16>, vector<16x32xf32> -> vector<16x32xf32>
    %c0_27 = arith.constant 0 : index
    %c0_28 = arith.constant 0 : index
    %c0_29 = arith.constant 0 : index
    %81 = vector.load %arg7[%c0_27, %c0_28, %c0_29] : memref<2x1x32xf32, #tpu.memory_space<vmem>>, vector<1x1x32xf32>
    %82 = vector.shape_cast %81 : vector<1x1x32xf32> to vector<1x32xf32>
    %83 = vector.broadcast %82 : vector<1x32xf32> to vector<16x32xf32>
    %84 = arith.addf %80, %83 : vector<16x32xf32>
    %85 = arith.addf %24, %84 : vector<16x32xf32>
    %c0_30 = arith.constant 0 : index
    %c0_31 = arith.constant 0 : index
    %c0_32 = arith.constant 0 : index
    %86 = vector.load %arg8[%c0_30, %c0_31, %c0_32] : memref<2x1x32xf32, #tpu.memory_space<vmem>>, vector<1x1x32xf32>
    %87 = vector.shape_cast %86 : vector<1x1x32xf32> to vector<1x32xf32>
    %c0_33 = arith.constant 0 : index
    %c0_34 = arith.constant 0 : index
    %c0_35 = arith.constant 0 : index
    %88 = vector.load %arg9[%c0_33, %c0_34, %c0_35] : memref<2x1x32xf32, #tpu.memory_space<vmem>>, vector<1x1x32xf32>
    %89 = vector.shape_cast %88 : vector<1x1x32xf32> to vector<1x32xf32>
    %cst_36 = arith.constant dense<0.000000e+00> : vector<16xf32>
    %90 = vector.multi_reduction <add>, %85, %cst_36 [1] : vector<16x32xf32> to vector<16xf32>
    %91 = vector.shape_cast %90 : vector<16xf32> to vector<16x1xf32>
    %cst_37 = arith.constant 3.200000e+01 : f32
    %92 = vector.broadcast %cst_37 : f32 to vector<16x1xf32>
    %93 = arith.divf %91, %92 : vector<16x1xf32>
    %94 = vector.broadcast %93 : vector<16x1xf32> to vector<16x32xf32>
    %95 = arith.subf %85, %94 : vector<16x32xf32>
    %96 = arith.mulf %95, %95 : vector<16x32xf32>
    %cst_38 = arith.constant dense<0.000000e+00> : vector<16xf32>
    %97 = vector.multi_reduction <add>, %96, %cst_38 [1] : vector<16x32xf32> to vector<16xf32>
    %98 = vector.shape_cast %97 : vector<16xf32> to vector<16x1xf32>
    %cst_39 = arith.constant 3.200000e+01 : f32
    %99 = vector.broadcast %cst_39 : f32 to vector<16x1xf32>
    %100 = arith.divf %98, %99 : vector<16x1xf32>
    %101 = vector.broadcast %93 : vector<16x1xf32> to vector<16x32xf32>
    %102 = arith.subf %85, %101 : vector<16x32xf32>
    %cst_40 = arith.constant 9.99999996E-13 : f32
    %103 = vector.broadcast %cst_40 : f32 to vector<16x1xf32>
    %104 = arith.addf %100, %103 : vector<16x1xf32>
    %105 = math.rsqrt %104 : vector<16x1xf32>
    %106 = vector.broadcast %105 : vector<16x1xf32> to vector<16x32xf32>
    %107 = arith.mulf %102, %106 : vector<16x32xf32>
    %108 = vector.broadcast %87 : vector<1x32xf32> to vector<16x32xf32>
    %109 = arith.mulf %107, %108 : vector<16x32xf32>
    %110 = vector.broadcast %89 : vector<1x32xf32> to vector<16x32xf32>
    %111 = arith.addf %109, %110 : vector<16x32xf32>
    %c0_41 = arith.constant 0 : index
    %c0_42 = arith.constant 0 : index
    %c0_43 = arith.constant 0 : index
    %112 = vector.load %arg10[%c0_41, %c0_42, %c0_43] : memref<2x32x64xbf16, #tpu.memory_space<vmem>>, vector<1x32x64xbf16>
    %113 = vector.shape_cast %112 : vector<1x32x64xbf16> to vector<32x64xbf16>
    %114 = arith.truncf %111 : vector<16x32xf32> to vector<16x32xbf16>
    %cst_44 = arith.constant dense<0.000000e+00> : vector<16x64xf32>
    %115 = tpu.matmul %114, %113, %cst_44 {dimension_numbers = #tpu.dot_dimension_numbers<[1], [0], [0], [1], [0, 0, 1, 1], [], []>} : vector<16x32xbf16>, vector<32x64xbf16>, vector<16x64xf32> -> vector<16x64xf32>
    %c0_45 = arith.constant 0 : index
    %c0_46 = arith.constant 0 : index
    %c0_47 = arith.constant 0 : index
    %116 = vector.load %arg11[%c0_45, %c0_46, %c0_47] : memref<2x1x64xf32, #tpu.memory_space<vmem>>, vector<1x1x64xf32>
    %117 = vector.shape_cast %116 : vector<1x1x64xf32> to vector<1x64xf32>
    %118 = vector.broadcast %117 : vector<1x64xf32> to vector<16x64xf32>
    %119 = arith.addf %115, %118 : vector<16x64xf32>
    %120 = arith.mulf %119, %119 : vector<16x64xf32>
    %121 = arith.mulf %119, %120 : vector<16x64xf32>
    %cst_48 = arith.constant 4.471500e-02 : f32
    %122 = vector.broadcast %cst_48 : f32 to vector<16x64xf32>
    %123 = arith.mulf %122, %121 : vector<16x64xf32>
    %124 = arith.addf %119, %123 : vector<16x64xf32>
    %cst_49 = arith.constant 0.797884583 : f32
    %125 = vector.broadcast %cst_49 : f32 to vector<16x64xf32>
    %126 = arith.mulf %125, %124 : vector<16x64xf32>
    %127 = math.tanh %126 : vector<16x64xf32>
    %cst_50 = arith.constant 1.000000e+00 : f32
    %128 = vector.broadcast %cst_50 : f32 to vector<16x64xf32>
    %129 = arith.addf %128, %127 : vector<16x64xf32>
    %cst_51 = arith.constant 5.000000e-01 : f32
    %130 = vector.broadcast %cst_51 : f32 to vector<16x64xf32>
    %131 = arith.mulf %130, %129 : vector<16x64xf32>
    %132 = arith.mulf %119, %131 : vector<16x64xf32>
    %c0_52 = arith.constant 0 : index
    %c0_53 = arith.constant 0 : index
    %c0_54 = arith.constant 0 : index
    %133 = vector.load %arg12[%c0_52, %c0_53, %c0_54] : memref<2x64x32xbf16, #tpu.memory_space<vmem>>, vector<1x64x32xbf16>
    %134 = vector.shape_cast %133 : vector<1x64x32xbf16> to vector<64x32xbf16>
    %135 = arith.truncf %132 : vector<16x64xf32> to vector<16x64xbf16>
    %cst_55 = arith.constant dense<0.000000e+00> : vector<16x32xf32>
    %136 = tpu.matmul %135, %134, %cst_55 {dimension_numbers = #tpu.dot_dimension_numbers<[1], [0], [0], [1], [0, 0, 1, 1], [], []>} : vector<16x64xbf16>, vector<64x32xbf16>, vector<16x32xf32> -> vector<16x32xf32>
    %c0_56 = arith.constant 0 : index
    %c0_57 = arith.constant 0 : index
    %c0_58 = arith.constant 0 : index
    %137 = vector.load %arg13[%c0_56, %c0_57, %c0_58] : memref<2x1x32xf32, #tpu.memory_space<vmem>>, vector<1x1x32xf32>
    %138 = vector.shape_cast %137 : vector<1x1x32xf32> to vector<1x32xf32>
    %139 = vector.broadcast %138 : vector<1x32xf32> to vector<16x32xf32>
    %140 = arith.addf %136, %139 : vector<16x32xf32>
    %141 = arith.addf %111, %140 : vector<16x32xf32>
    %c0_59 = arith.constant 0 : index
    %c0_60 = arith.constant 0 : index
    %c0_61 = arith.constant 0 : index
    %142 = vector.load %arg14[%c0_59, %c0_60, %c0_61] : memref<2x1x32xf32, #tpu.memory_space<vmem>>, vector<1x1x32xf32>
    %143 = vector.shape_cast %142 : vector<1x1x32xf32> to vector<1x32xf32>
    %c0_62 = arith.constant 0 : index
    %c0_63 = arith.constant 0 : index
    %c0_64 = arith.constant 0 : index
    %144 = vector.load %arg15[%c0_62, %c0_63, %c0_64] : memref<2x1x32xf32, #tpu.memory_space<vmem>>, vector<1x1x32xf32>
    %145 = vector.shape_cast %144 : vector<1x1x32xf32> to vector<1x32xf32>
    %cst_65 = arith.constant dense<0.000000e+00> : vector<16xf32>
    %146 = vector.multi_reduction <add>, %141, %cst_65 [1] : vector<16x32xf32> to vector<16xf32>
    %147 = vector.shape_cast %146 : vector<16xf32> to vector<16x1xf32>
    %cst_66 = arith.constant 3.200000e+01 : f32
    %148 = vector.broadcast %cst_66 : f32 to vector<16x1xf32>
    %149 = arith.divf %147, %148 : vector<16x1xf32>
    %150 = vector.broadcast %149 : vector<16x1xf32> to vector<16x32xf32>
    %151 = arith.subf %141, %150 : vector<16x32xf32>
    %152 = arith.mulf %151, %151 : vector<16x32xf32>
    %cst_67 = arith.constant dense<0.000000e+00> : vector<16xf32>
    %153 = vector.multi_reduction <add>, %152, %cst_67 [1] : vector<16x32xf32> to vector<16xf32>
    %154 = vector.shape_cast %153 : vector<16xf32> to vector<16x1xf32>
    %cst_68 = arith.constant 3.200000e+01 : f32
    %155 = vector.broadcast %cst_68 : f32 to vector<16x1xf32>
    %156 = arith.divf %154, %155 : vector<16x1xf32>
    %157 = vector.broadcast %149 : vector<16x1xf32> to vector<16x32xf32>
    %158 = arith.subf %141, %157 : vector<16x32xf32>
    %cst_69 = arith.constant 9.99999996E-13 : f32
    %159 = vector.broadcast %cst_69 : f32 to vector<16x1xf32>
    %160 = arith.addf %156, %159 : vector<16x1xf32>
    %161 = math.rsqrt %160 : vector<16x1xf32>
    %162 = vector.broadcast %161 : vector<16x1xf32> to vector<16x32xf32>
    %163 = arith.mulf %158, %162 : vector<16x32xf32>
    %164 = vector.broadcast %143 : vector<1x32xf32> to vector<16x32xf32>
    %165 = arith.mulf %163, %164 : vector<16x32xf32>
    %166 = vector.broadcast %145 : vector<1x32xf32> to vector<16x32xf32>
    %167 = arith.addf %165, %166 : vector<16x32xf32>
    %c1 = arith.constant 1 : index
    %c0_70 = arith.constant 0 : index
    %c0_71 = arith.constant 0 : index
    %168 = vector.load %arg4[%c1, %c0_70, %c0_71] : memref<2x32x768xbf16, #tpu.memory_space<vmem>>, vector<1x32x768xbf16>
    %169 = vector.shape_cast %168 : vector<1x32x768xbf16> to vector<32x768xbf16>
    %170 = arith.truncf %167 : vector<16x32xf32> to vector<16x32xbf16>
    %cst_72 = arith.constant dense<0.000000e+00> : vector<16x768xf32>
    %171 = tpu.matmul %170, %169, %cst_72 {dimension_numbers = #tpu.dot_dimension_numbers<[1], [0], [0], [1], [0, 0, 1, 1], [], []>} : vector<16x32xbf16>, vector<32x768xbf16>, vector<16x768xf32> -> vector<16x768xf32>
    %c1_73 = arith.constant 1 : index
    %c0_74 = arith.constant 0 : index
    %c0_75 = arith.constant 0 : index
    %172 = vector.load %arg5[%c1_73, %c0_74, %c0_75] : memref<2x1x768xf32, #tpu.memory_space<vmem>>, vector<1x1x768xf32>
    %173 = vector.shape_cast %172 : vector<1x1x768xf32> to vector<1x768xf32>
    %174 = vector.broadcast %173 : vector<1x768xf32> to vector<16x768xf32>
    %175 = arith.addf %171, %174 : vector<16x768xf32>
    %176 = vector.extract_strided_slice %175 {offsets = [0, 0], sizes = [16, 128], strides = [1, 1]} : vector<16x768xf32> to vector<16x128xf32>
    %177 = vector.shape_cast %176 : vector<16x128xf32> to vector<2x8x128xf32>
    %178 = vector.extract_strided_slice %175 {offsets = [0, 128], sizes = [16, 128], strides = [1, 1]} : vector<16x768xf32> to vector<16x128xf32>
    %179 = vector.shape_cast %178 : vector<16x128xf32> to vector<2x8x128xf32>
    %180 = tpu.concatenate %177, %179 in 0 : vector<2x8x128xf32>, vector<2x8x128xf32> -> vector<4x8x128xf32>
    %181 = vector.extract_strided_slice %175 {offsets = [0, 256], sizes = [16, 128], strides = [1, 1]} : vector<16x768xf32> to vector<16x128xf32>
    %182 = vector.shape_cast %181 : vector<16x128xf32> to vector<2x8x128xf32>
    %183 = vector.extract_strided_slice %175 {offsets = [0, 384], sizes = [16, 128], strides = [1, 1]} : vector<16x768xf32> to vector<16x128xf32>
    %184 = vector.shape_cast %183 : vector<16x128xf32> to vector<2x8x128xf32>
    %185 = tpu.concatenate %182, %184 in 0 : vector<2x8x128xf32>, vector<2x8x128xf32> -> vector<4x8x128xf32>
    %186 = vector.extract_strided_slice %175 {offsets = [0, 512], sizes = [16, 128], strides = [1, 1]} : vector<16x768xf32> to vector<16x128xf32>
    %187 = vector.shape_cast %186 : vector<16x128xf32> to vector<2x8x128xf32>
    %188 = vector.extract_strided_slice %175 {offsets = [0, 640], sizes = [16, 128], strides = [1, 1]} : vector<16x768xf32> to vector<16x128xf32>
    %189 = vector.shape_cast %188 : vector<16x128xf32> to vector<2x8x128xf32>
    %190 = tpu.concatenate %187, %189 in 0 : vector<2x8x128xf32>, vector<2x8x128xf32> -> vector<4x8x128xf32>
    %191 = arith.truncf %180 : vector<4x8x128xf32> to vector<4x8x128xbf16>
    %192 = arith.truncf %185 : vector<4x8x128xf32> to vector<4x8x128xbf16>
    "tpu.trace_start"() <{level = 10 : i32, message = "gsd,gtd->gst"}> : () -> ()
    %cst_76 = arith.constant dense<0.000000e+00> : vector<4x8x8xf32>
    %193 = tpu.matmul %191, %192, %cst_76 {dimension_numbers = #tpu.dot_dimension_numbers<[2], [2], [1], [1], [0, 0, 0, 1, 1, 1], [0], [0]>} : vector<4x8x128xbf16>, vector<4x8x128xbf16>, vector<4x8x8xf32> -> vector<4x8x8xf32>
    "tpu.trace_stop"() : () -> ()
    %cst_77 = arith.constant 2.500000e-01 : f32
    %194 = vector.broadcast %cst_77 : f32 to vector<4x8x8xf32>
    %195 = arith.mulf %193, %194 : vector<4x8x8xf32>
    %196 = arith.addf %195, %29 : vector<4x8x8xf32>
    %cst_78 = arith.constant dense<0xFF800000> : vector<4x8xf32>
    %197 = vector.multi_reduction <maximumf>, %196, %cst_78 [2] : vector<4x8x8xf32> to vector<4x8xf32>
    %198 = vector.shape_cast %197 : vector<4x8xf32> to vector<4x8x1xf32>
    %199 = vector.broadcast %198 : vector<4x8x1xf32> to vector<4x8x8xf32>
    %200 = arith.subf %196, %199 : vector<4x8x8xf32>
    %201 = math.exp %200 : vector<4x8x8xf32>
    %cst_79 = arith.constant dense<0.000000e+00> : vector<4x8xf32>
    %202 = vector.multi_reduction <add>, %201, %cst_79 [2] : vector<4x8x8xf32> to vector<4x8xf32>
    %203 = vector.shape_cast %202 : vector<4x8xf32> to vector<4x8x1xf32>
    %204 = tpu.reciprocal %203 {approx = true} : vector<4x8x1xf32> -> vector<4x8x1xf32>
    %205 = vector.broadcast %204 : vector<4x8x1xf32> to vector<4x8x8xf32>
    %206 = arith.mulf %201, %205 : vector<4x8x8xf32>
    %207 = arith.truncf %206 : vector<4x8x8xf32> to vector<4x8x8xbf16>
    %208 = arith.truncf %190 : vector<4x8x128xf32> to vector<4x8x128xbf16>
    "tpu.trace_start"() <{level = 10 : i32, message = "gst,gtd->gsd"}> : () -> ()
    %cst_80 = arith.constant dense<0.000000e+00> : vector<4x8x128xf32>
    %209 = tpu.matmul %207, %208, %cst_80 {dimension_numbers = #tpu.dot_dimension_numbers<[2], [1], [1], [2], [0, 0, 0, 1, 1, 2], [0], [0]>} : vector<4x8x8xbf16>, vector<4x8x128xbf16>, vector<4x8x128xf32> -> vector<4x8x128xf32>
    "tpu.trace_stop"() : () -> ()
    %210 = vector.extract_strided_slice %209 {offsets = [0, 0, 0], sizes = [2, 8, 128], strides = [1, 1, 1]} : vector<4x8x128xf32> to vector<2x8x128xf32>
    %211 = vector.shape_cast %210 : vector<2x8x128xf32> to vector<16x128xf32>
    %212 = vector.extract_strided_slice %209 {offsets = [2, 0, 0], sizes = [2, 8, 128], strides = [1, 1, 1]} : vector<4x8x128xf32> to vector<2x8x128xf32>
    %213 = vector.shape_cast %212 : vector<2x8x128xf32> to vector<16x128xf32>
    %214 = tpu.concatenate %211, %213 in 1 : vector<16x128xf32>, vector<16x128xf32> -> vector<16x256xf32>
    %c1_81 = arith.constant 1 : index
    %c0_82 = arith.constant 0 : index
    %c0_83 = arith.constant 0 : index
    %215 = vector.load %arg6[%c1_81, %c0_82, %c0_83] : memref<2x256x32xbf16, #tpu.memory_space<vmem>>, vector<1x256x32xbf16>
    %216 = vector.shape_cast %215 : vector<1x256x32xbf16> to vector<256x32xbf16>
    %217 = arith.truncf %214 : vector<16x256xf32> to vector<16x256xbf16>
    %cst_84 = arith.constant dense<0.000000e+00> : vector<16x32xf32>
    %218 = tpu.matmul %217, %216, %cst_84 {dimension_numbers = #tpu.dot_dimension_numbers<[1], [0], [0], [1], [0, 0, 1, 1], [], []>} : vector<16x256xbf16>, vector<256x32xbf16>, vector<16x32xf32> -> vector<16x32xf32>
    %c1_85 = arith.constant 1 : index
    %c0_86 = arith.constant 0 : index
    %c0_87 = arith.constant 0 : index
    %219 = vector.load %arg7[%c1_85, %c0_86, %c0_87] : memref<2x1x32xf32, #tpu.memory_space<vmem>>, vector<1x1x32xf32>
    %220 = vector.shape_cast %219 : vector<1x1x32xf32> to vector<1x32xf32>
    %221 = vector.broadcast %220 : vector<1x32xf32> to vector<16x32xf32>
    %222 = arith.addf %218, %221 : vector<16x32xf32>
    %223 = arith.addf %167, %222 : vector<16x32xf32>
    %c1_88 = arith.constant 1 : index
    %c0_89 = arith.constant 0 : index
    %c0_90 = arith.constant 0 : index
    %224 = vector.load %arg8[%c1_88, %c0_89, %c0_90] : memref<2x1x32xf32, #tpu.memory_space<vmem>>, vector<1x1x32xf32>
    %225 = vector.shape_cast %224 : vector<1x1x32xf32> to vector<1x32xf32>
    %c1_91 = arith.constant 1 : index
    %c0_92 = arith.constant 0 : index
    %c0_93 = arith.constant 0 : index
    %226 = vector.load %arg9[%c1_91, %c0_92, %c0_93] : memref<2x1x32xf32, #tpu.memory_space<vmem>>, vector<1x1x32xf32>
    %227 = vector.shape_cast %226 : vector<1x1x32xf32> to vector<1x32xf32>
    %cst_94 = arith.constant dense<0.000000e+00> : vector<16xf32>
    %228 = vector.multi_reduction <add>, %223, %cst_94 [1] : vector<16x32xf32> to vector<16xf32>
    %229 = vector.shape_cast %228 : vector<16xf32> to vector<16x1xf32>
    %cst_95 = arith.constant 3.200000e+01 : f32
    %230 = vector.broadcast %cst_95 : f32 to vector<16x1xf32>
    %231 = arith.divf %229, %230 : vector<16x1xf32>
    %232 = vector.broadcast %231 : vector<16x1xf32> to vector<16x32xf32>
    %233 = arith.subf %223, %232 : vector<16x32xf32>
    %234 = arith.mulf %233, %233 : vector<16x32xf32>
    %cst_96 = arith.constant dense<0.000000e+00> : vector<16xf32>
    %235 = vector.multi_reduction <add>, %234, %cst_96 [1] : vector<16x32xf32> to vector<16xf32>
    %236 = vector.shape_cast %235 : vector<16xf32> to vector<16x1xf32>
    %cst_97 = arith.constant 3.200000e+01 : f32
    %237 = vector.broadcast %cst_97 : f32 to vector<16x1xf32>
    %238 = arith.divf %236, %237 : vector<16x1xf32>
    %239 = vector.broadcast %231 : vector<16x1xf32> to vector<16x32xf32>
    %240 = arith.subf %223, %239 : vector<16x32xf32>
    %cst_98 = arith.constant 9.99999996E-13 : f32
    %241 = vector.broadcast %cst_98 : f32 to vector<16x1xf32>
    %242 = arith.addf %238, %241 : vector<16x1xf32>
    %243 = math.rsqrt %242 : vector<16x1xf32>
    %244 = vector.broadcast %243 : vector<16x1xf32> to vector<16x32xf32>
    %245 = arith.mulf %240, %244 : vector<16x32xf32>
    %246 = vector.broadcast %225 : vector<1x32xf32> to vector<16x32xf32>
    %247 = arith.mulf %245, %246 : vector<16x32xf32>
    %248 = vector.broadcast %227 : vector<1x32xf32> to vector<16x32xf32>
    %249 = arith.addf %247, %248 : vector<16x32xf32>
    %c1_99 = arith.constant 1 : index
    %c0_100 = arith.constant 0 : index
    %c0_101 = arith.constant 0 : index
    %250 = vector.load %arg10[%c1_99, %c0_100, %c0_101] : memref<2x32x64xbf16, #tpu.memory_space<vmem>>, vector<1x32x64xbf16>
    %251 = vector.shape_cast %250 : vector<1x32x64xbf16> to vector<32x64xbf16>
    %252 = arith.truncf %249 : vector<16x32xf32> to vector<16x32xbf16>
    %cst_102 = arith.constant dense<0.000000e+00> : vector<16x64xf32>
    %253 = tpu.matmul %252, %251, %cst_102 {dimension_numbers = #tpu.dot_dimension_numbers<[1], [0], [0], [1], [0, 0, 1, 1], [], []>} : vector<16x32xbf16>, vector<32x64xbf16>, vector<16x64xf32> -> vector<16x64xf32>
    %c1_103 = arith.constant 1 : index
    %c0_104 = arith.constant 0 : index
    %c0_105 = arith.constant 0 : index
    %254 = vector.load %arg11[%c1_103, %c0_104, %c0_105] : memref<2x1x64xf32, #tpu.memory_space<vmem>>, vector<1x1x64xf32>
    %255 = vector.shape_cast %254 : vector<1x1x64xf32> to vector<1x64xf32>
    %256 = vector.broadcast %255 : vector<1x64xf32> to vector<16x64xf32>
    %257 = arith.addf %253, %256 : vector<16x64xf32>
    %258 = arith.mulf %257, %257 : vector<16x64xf32>
    %259 = arith.mulf %257, %258 : vector<16x64xf32>
    %cst_106 = arith.constant 4.471500e-02 : f32
    %260 = vector.broadcast %cst_106 : f32 to vector<16x64xf32>
    %261 = arith.mulf %260, %259 : vector<16x64xf32>
    %262 = arith.addf %257, %261 : vector<16x64xf32>
    %cst_107 = arith.constant 0.797884583 : f32
    %263 = vector.broadcast %cst_107 : f32 to vector<16x64xf32>
    %264 = arith.mulf %263, %262 : vector<16x64xf32>
    %265 = math.tanh %264 : vector<16x64xf32>
    %cst_108 = arith.constant 1.000000e+00 : f32
    %266 = vector.broadcast %cst_108 : f32 to vector<16x64xf32>
    %267 = arith.addf %266, %265 : vector<16x64xf32>
    %cst_109 = arith.constant 5.000000e-01 : f32
    %268 = vector.broadcast %cst_109 : f32 to vector<16x64xf32>
    %269 = arith.mulf %268, %267 : vector<16x64xf32>
    %270 = arith.mulf %257, %269 : vector<16x64xf32>
    %c1_110 = arith.constant 1 : index
    %c0_111 = arith.constant 0 : index
    %c0_112 = arith.constant 0 : index
    %271 = vector.load %arg12[%c1_110, %c0_111, %c0_112] : memref<2x64x32xbf16, #tpu.memory_space<vmem>>, vector<1x64x32xbf16>
    %272 = vector.shape_cast %271 : vector<1x64x32xbf16> to vector<64x32xbf16>
    %273 = arith.truncf %270 : vector<16x64xf32> to vector<16x64xbf16>
    %cst_113 = arith.constant dense<0.000000e+00> : vector<16x32xf32>
    %274 = tpu.matmul %273, %272, %cst_113 {dimension_numbers = #tpu.dot_dimension_numbers<[1], [0], [0], [1], [0, 0, 1, 1], [], []>} : vector<16x64xbf16>, vector<64x32xbf16>, vector<16x32xf32> -> vector<16x32xf32>
    %c1_114 = arith.constant 1 : index
    %c0_115 = arith.constant 0 : index
    %c0_116 = arith.constant 0 : index
    %275 = vector.load %arg13[%c1_114, %c0_115, %c0_116] : memref<2x1x32xf32, #tpu.memory_space<vmem>>, vector<1x1x32xf32>
    %276 = vector.shape_cast %275 : vector<1x1x32xf32> to vector<1x32xf32>
    %277 = vector.broadcast %276 : vector<1x32xf32> to vector<16x32xf32>
    %278 = arith.addf %274, %277 : vector<16x32xf32>
    %279 = arith.addf %249, %278 : vector<16x32xf32>
    %c1_117 = arith.constant 1 : index
    %c0_118 = arith.constant 0 : index
    %c0_119 = arith.constant 0 : index
    %280 = vector.load %arg14[%c1_117, %c0_118, %c0_119] : memref<2x1x32xf32, #tpu.memory_space<vmem>>, vector<1x1x32xf32>
    %281 = vector.shape_cast %280 : vector<1x1x32xf32> to vector<1x32xf32>
    %c1_120 = arith.constant 1 : index
    %c0_121 = arith.constant 0 : index
    %c0_122 = arith.constant 0 : index
    %282 = vector.load %arg15[%c1_120, %c0_121, %c0_122] : memref<2x1x32xf32, #tpu.memory_space<vmem>>, vector<1x1x32xf32>
    %283 = vector.shape_cast %282 : vector<1x1x32xf32> to vector<1x32xf32>
    %cst_123 = arith.constant dense<0.000000e+00> : vector<16xf32>
    %284 = vector.multi_reduction <add>, %279, %cst_123 [1] : vector<16x32xf32> to vector<16xf32>
    %285 = vector.shape_cast %284 : vector<16xf32> to vector<16x1xf32>
    %cst_124 = arith.constant 3.200000e+01 : f32
    %286 = vector.broadcast %cst_124 : f32 to vector<16x1xf32>
    %287 = arith.divf %285, %286 : vector<16x1xf32>
    %288 = vector.broadcast %287 : vector<16x1xf32> to vector<16x32xf32>
    %289 = arith.subf %279, %288 : vector<16x32xf32>
    %290 = arith.mulf %289, %289 : vector<16x32xf32>
    %cst_125 = arith.constant dense<0.000000e+00> : vector<16xf32>
    %291 = vector.multi_reduction <add>, %290, %cst_125 [1] : vector<16x32xf32> to vector<16xf32>
    %292 = vector.shape_cast %291 : vector<16xf32> to vector<16x1xf32>
    %cst_126 = arith.constant 3.200000e+01 : f32
    %293 = vector.broadcast %cst_126 : f32 to vector<16x1xf32>
    %294 = arith.divf %292, %293 : vector<16x1xf32>
    %295 = vector.broadcast %287 : vector<16x1xf32> to vector<16x32xf32>
    %296 = arith.subf %279, %295 : vector<16x32xf32>
    %cst_127 = arith.constant 9.99999996E-13 : f32
    %297 = vector.broadcast %cst_127 : f32 to vector<16x1xf32>
    %298 = arith.addf %294, %297 : vector<16x1xf32>
    %299 = math.rsqrt %298 : vector<16x1xf32>
    %300 = vector.broadcast %299 : vector<16x1xf32> to vector<16x32xf32>
    %301 = arith.mulf %296, %300 : vector<16x32xf32>
    %302 = vector.broadcast %281 : vector<1x32xf32> to vector<16x32xf32>
    %303 = arith.mulf %301, %302 : vector<16x32xf32>
    %304 = vector.broadcast %283 : vector<1x32xf32> to vector<16x32xf32>
    %305 = arith.addf %303, %304 : vector<16x32xf32>
    %306 = vector.extract_strided_slice %305 {offsets = [0, 0], sizes = [1, 32], strides = [1, 1]} : vector<16x32xf32> to vector<1x32xf32>
    %307 = vector.extract_strided_slice %305 {offsets = [8, 0], sizes = [1, 32], strides = [1, 1]} : vector<16x32xf32> to vector<1x32xf32>
    %cst_128 = arith.constant 0.000000e+00 : f32
    %308 = vector.broadcast %cst_128 : f32 to vector<6x32xf32>
    %309 = tpu.concatenate %306, %307, %308 in 0 : vector<1x32xf32>, vector<1x32xf32>, vector<6x32xf32> -> vector<8x32xf32>
    %c0_129 = arith.constant 0 : index
    %c0_130 = arith.constant 0 : index
    %310 = vector.load %arg16[%c0_129, %c0_130] : memref<32x128xbf16, #tpu.memory_space<vmem>>, vector<32x128xbf16>
    %311 = arith.truncf %309 : vector<8x32xf32> to vector<8x32xbf16>
    %cst_131 = arith.constant dense<0.000000e+00> : vector<8x128xf32>
    %312 = tpu.matmul %311, %310, %cst_131 {dimension_numbers = #tpu.dot_dimension_numbers<[1], [0], [0], [1], [0, 0, 1, 1], [], []>} : vector<8x32xbf16>, vector<32x128xbf16>, vector<8x128xf32> -> vector<8x128xf32>
    %c0_132 = arith.constant 0 : index
    %c0_133 = arith.constant 0 : index
    %313 = vector.load %arg17[%c0_132, %c0_133] : memref<1x128xf32, #tpu.memory_space<vmem>>, vector<1x128xf32>
    %314 = vector.broadcast %313 : vector<1x128xf32> to vector<8x128xf32>
    %315 = arith.addf %312, %314 : vector<8x128xf32>
    %316 = math.tanh %315 : vector<8x128xf32>
    %c0_134 = arith.constant 0 : index
    %c0_135 = arith.constant 0 : index
    %317 = vector.load %arg18[%c0_134, %c0_135] : memref<128x128xbf16, #tpu.memory_space<vmem>>, vector<128x128xbf16>
    %318 = arith.truncf %316 : vector<8x128xf32> to vector<8x128xbf16>
    %cst_136 = arith.constant dense<0.000000e+00> : vector<8x128xf32>
    %319 = tpu.matmul %318, %317, %cst_136 {dimension_numbers = #tpu.dot_dimension_numbers<[1], [0], [0], [1], [0, 0, 1, 1], [], []>} : vector<8x128xbf16>, vector<128x128xbf16>, vector<8x128xf32> -> vector<8x128xf32>
    %c0_137 = arith.constant 0 : index
    %c0_138 = arith.constant 0 : index
    %320 = vector.load %arg19[%c0_137, %c0_138] : memref<1x128xf32, #tpu.memory_space<vmem>>, vector<1x128xf32>
    %321 = vector.broadcast %320 : vector<1x128xf32> to vector<8x128xf32>
    %322 = arith.addf %319, %321 : vector<8x128xf32>
    %c0_139 = arith.constant 0 : index
    %c0_140 = arith.constant 0 : index
    %323 = vector.load %arg21[%c0_139, %c0_140] : memref<8x128xf32, #tpu.memory_space<vmem>>, vector<8x128xf32>
    tpu.vector_store %arg21[%c0_139, %c0_140], %316 {strides = array<i32>} : memref<8x128xf32, #tpu.memory_space<vmem>>, vector<8x128xf32>,
    %c0_141 = arith.constant 0 : index
    %c0_142 = arith.constant 0 : index
    %324 = vector.load %arg20[%c0_141, %c0_142] : memref<8x128xf32, #tpu.memory_space<vmem>>, vector<8x128xf32>
    tpu.vector_store %arg20[%c0_141, %c0_142], %322 {strides = array<i32>} : memref<8x128xf32, #tpu.memory_space<vmem>>, vector<8x128xf32>,
    return
  }
}

</mosaic_0001>

<bundles_post_ra>
// kernel: relation_classifier_forward.1
= control target key start
LH: loop header
LB: loop body
LE: loop exit
PB: predicated region body
PF: predicated region fallthrough
CT: control target
= control target key end

     0   :  { %vm72_vm0 = vcmask 261120   ;;  %v3144_v15 = vmov 0   ;;  %v3145_v44 = vmov 0.0   ;;  %vm3146_vm1 = vmmov 0   ;;  %s3809_s0 = inlined_call_operand.vmem [shape: f32[16,32], index: 0, kind: input, shape index: {}]   ;;  %s3810_s4 = inlined_call_operand.vmem [shape: bf16[2,32,768], index: 4, kind: input, shape index: {}]   ;;  %s3811_s2 = inlined_call_operand.vmem [shape: f32[1,32], index: 2, kind: input, shape index: {}]   ;;  %s3812_s3 = inlined_call_operand.vmem [shape: f32[1,32], index: 3, kind: input, shape index: {}]   ;;  %s3813_s5 = inlined_call_operand.vmem [shape: f32[2,1,768], index: 5, kind: input, shape index: {}]   ;;  %s3814_s1 = inlined_call_operand.vmem [shape: f32[2,8], index: 1, kind: input, shape index: {}]   ;;  %s3815_s6 = inlined_call_operand.vmem [shape: bf16[2,256,32], index: 6, kind: input, shape index: {}]   ;;  %s3816_s7 = inlined_call_operand.vmem [shape: f32[2,1,32], index: 7, kind: input, shape index: {}]   ;;  %s3817_s10 = inlined_call_operand.vmem [shape: bf16[2,32,64], index: 10, kind: input, shape index: {}]   ;;  %s3818_s8 = inlined_call_operand.vmem [shape: f32[2,1,32], index: 8, kind: input, shape index: {}]   ;;  %s3819_s9 = inlined_call_operand.vmem [shape: f32[2,1,32], index: 9, kind: input, shape index: {}]   ;;  %s3820_s12 = inlined_call_operand.vmem [shape: bf16[2,64,32], index: 12, kind: input, shape index: {}]   ;;  %s3821_s11 = inlined_call_operand.vmem [shape: f32[2,1,64], index: 11, kind: input, shape index: {}]   ;;  %s3822_s13 = inlined_call_operand.vmem [shape: f32[2,1,32], index: 13, kind: input, shape index: {}]   ;;  %s3823_s14 = inlined_call_operand.vmem [shape: f32[2,1,32], index: 14, kind: input, shape index: {}]   ;;  %s3824_s15 = inlined_call_operand.vmem [shape: f32[2,1,32], index: 15, kind: input, shape index: {}]   ;;  %s3825_s16 = inlined_call_operand.vmem [shape: bf16[32,128], index: 16, kind: input, shape index: {}]   ;;  %s3826_s18 = inlined_call_operand.vmem [shape: bf16[128,128], index: 18, kind: input, shape index: {}]   ;;  %s3827_s17 = inlined_call_operand.vmem [shape: f32[1,128], index: 17, kind: input, shape index: {}]   ;;  %s3828_s21 = inlined_call_operand.vmem [shape: f32[8,128], index: 21, kind: output, shape index: {1}]   ;;  %s3829_s19 = inlined_call_operand.vmem [shape: f32[1,128], index: 19, kind: input, shape index: {}]   ;;  %s3830_s20 = inlined_call_operand.vmem [shape: f32[8,128], index: 20, kind: output, shape index: {0}]  }
   0x1   :  { %3834 = sst [smem:[#allocation2_spill]] %s3809_s0  ;;  %290 = vmatprep.mubr.bf16.mxu0 %v3144_v15  ;;  %2824 = vmatprep.subr.bf16.mxu1 %v3145_v44  ;;  %v129_v45 = vlaneseq  ;;  %vm619_vm2 = vcmask 1043456   ;;  %vm563_vm3 = vcmask 64512   ;;  %vm1151_vm4 = vcmask 523264  }
   0x2   :  { %3835 = sst [smem:[#allocation3_spill]] %s3810_s4  ;;  %2826 = vmatprep.mubr.msk.bf16.mxu1 %vm3146_vm1, %v3145_v44  ;;  %vm2346_vm5 = vcmask 1040384   ;;  %vm2348_vm6 = vcmask 1041408  }
   0x3   :  { %3836 = sst [smem:[#allocation4_spill]] %s3811_s2  ;;  %v3328_v46 = vshrl.u32 %v129_v45, 7 }
   0x4   :  { %3837 = sst [smem:[#allocation5_spill]] %s3812_s3 }
   0x5   :  { %3838 = sst [smem:[#allocation6_spill]] %s3813_s5  ;;  %v175_v48 = vsub.s32 2, %v3328_v46  ;;  %v3340_v53 = vsub.s32 0, %v3328_v46  ;;  %v179_v55 = vsub.s32 3, %v3328_v46  ;;  %v183_v63 = vsub.s32 4, %v3328_v46 }
   0x6   :  { %3839 = sst [smem:[#allocation7_spill]] %s3814_s1 }
   0x7   :  { %s3840_s26 = sld [smem:[#allocation2_spill]] }
   0x8   :  { %s3841_s0 = sld [smem:[#allocation3_spill]] }
   0x9   :  { %s3842_s27 = sld [smem:[#allocation4_spill]] }
   0xa   :  { %s3843_s29 = sld [smem:[#allocation5_spill]] }
   0xb   :  { %s3844_s1 = sld [smem:[#allocation6_spill]] }
   0xc   :  { %s3845_s4 = sld [smem:[#allocation7_spill]] }
   0xd   :  { %v68_v0 = vld [vmem:[%s3840_s26] sm:$0xff]  ;;  %v69_v1 = vld [vmem:[%s3840_s26 + $0x8] sm:$0xff] }
   0xe   :  { %v73_v2 = vsel %vm72_vm0, %v68_v0, 0.0  ;;  %v76_v3 = vsel %vm72_vm0, %v69_v1, 0.0  ;;  %v2992_v14 = vld [vmem:[%s3841_s0 + $0x34] ss:$24 sps:$4 sm:$0xff]   ;;  %v2994_v16 = vld [vmem:[%s3841_s0 + $0x30] ss:$24 sps:$4 sm:$0xff]  }
   0xf   :  { %74 = vadd.xlane.f32.xlu0 %v73_v2  ;;  %270 = vmatprep.subr.bf16.mxu0 %v2992_v14  ;;  %v2995_v17 = vld [vmem:[%s3841_s0 + $0x4] ss:$24 sps:$4 sm:$0xff]   ;;  %v2997_v18 = vld [vmem:[%s3841_s0] ss:$24 sps:$4 sm:$0xff]   ;;  %v3009_v42 = vld [vmem:[%s3841_s0 + $0x14] ss:$24 sps:$4 sm:$0xff]  }
  0x10   :  { %271 = vmatpush1.bf16.msra.mxu0 %v2994_v16  ;;  %v3000_v19 = vld [vmem:[%s3841_s0 + $0x3c] ss:$24 sps:$4 sm:$0xff]   ;;  %v2540_v28 = vld [vmem:[%s3842_s27] ss:$0 sm:$0xff]  ;;  %v2998_v36 = vld [vmem:[%s3841_s0 + $0x38] ss:$24 sps:$4 sm:$0xff]  }
  0x11   :  { %272 = vmatprep.subr.bf16.mxu0 %v2995_v17  ;;  %v2541_v32 = vld [vmem:[%s3843_s29] ss:$0 sm:$0xff]  ;;  %v3003_v38 = vld [vmem:[%s3841_s0 + $0xc] ss:$24 sps:$4 sm:$0xff]   ;;  %v3007_v43 = vld [vmem:[%s3841_s0 + $0x10] ss:$24 sps:$4 sm:$0xff]  }
  0x12   :  { %v3001_v39 = vld [vmem:[%s3841_s0 + $0x8] ss:$24 sps:$4 sm:$0xff]   ;;  %v3006_v40 = vld [vmem:[%s3841_s0 + $0x44] ss:$24 sps:$4 sm:$0xff]   ;;  %v171_v2 = vsub.s32 1, %v3328_v46 }
  0x13   :  { %77 = vadd.xlane.f32.xlu0 %v76_v3  ;;  %v3004_v41 = vld [vmem:[%s3841_s0 + $0x40] ss:$24 sps:$4 sm:$0xff]  }
  0x14   :  { %273 = vmatpush1.bf16.msra.mxu0 %v2997_v18  ;;  %v3334_v50 = vld [vmem:[%s3844_s1] sm:$0x3f] }
  0x15   :  { %313 = vmatprep.subr.bf16.mxu0 %v3000_v19  ;;  %v176_v52 = vrot.slane %v3334_v50, %v175_v48  ;;  %v168_v58 = vrot.slane %v3334_v50, %v3340_v53  ;;  %v180_v61 = vrot.slane %v3334_v50, %v179_v55 }
  0x98   :  { %v75_v4 = vpop.xlane.xlu0 %74 }
  0x99   :  { %v80_v5 = vmul.f32 0.03125, %v75_v4 }
  0x9b   :  { %v82_v6 = vsub.f32 %v68_v0, %v80_v5 }
  0x9c   :  { %v78_v7 = vpop.xlane.xlu0 %77 }
  0x9d   :  { %v81_v8 = vmul.f32 0.03125, %v78_v7  ;;  %v84_v9 = vmul.f32 %v82_v6, %v82_v6 }
  0x9f   :  { %v83_v10 = vsub.f32 %v69_v1, %v81_v8  ;;  %v86_v11 = vsel %vm72_vm0, %v84_v9, 0.0  ;;  %v172_v9 = vrot.slane %v3334_v50, %v171_v2 }
  0xa0   :  { %87 = vadd.xlane.f32.xlu1 %v86_v11 }
  0xa1   :  { %v85_v12 = vmul.f32 %v83_v10, %v83_v10 }
  0xa3   :  { %v89_v13 = vsel %vm72_vm0, %v85_v12, 0.0 }
  0xa4   :  { %90 = vadd.xlane.f32.xlu1 %v89_v13 }
 0x129   :  { %v88_v20 = vpop.xlane.xlu1 %87 }
 0x12a   :  { %v92_v21 = vmul.f32 0.03125, %v88_v20 }
 0x12c   :  { %v94_v22 = vadd.f32 1e-12, %v92_v21 }
 0x12d   :  { %v91_v23 = vpop.xlane.xlu1 %90 }
 0x12e   :  { %3082 = vrsqrt.f32 %v94_v22  ;;  %v93_v24 = vmul.f32 0.03125, %v91_v23 }
 0x130   :  { %v95_v25 = vadd.f32 1e-12, %v93_v24 }
 0x132   :  { %3084 = vrsqrt.f32 %v95_v25 }
 0x13b   :  { %v3083_v26 = vpop.eup %3082 }
 0x13c   :  { %v98_v27 = vmul.f32 %v3083_v26, %v82_v6  ;;  %v184_v6 = vrot.slane %v3334_v50, %v183_v63 }
 0x13e   :  { %v106_v31 = vmul.f32 %v2540_v28, %v98_v27 }
 0x13f   :  { %v3085_v29 = vpop.eup %3084 }
 0x140   :  { %v99_v30 = vmul.f32 %v3085_v29, %v83_v10  ;;  %v3290_v34 = vadd.f32 %v2541_v32, %v106_v31 }
 0x142   :  { %v107_v33 = vmul.f32 %v2540_v28, %v99_v30  ;;  %v3147_v28 = vmov 1966171168  }
 0x143   :  { %v127_v29 = vunpack.c.l.s4 %v3147_v28 }
 0x144   :  { %v3292_v35 = vadd.f32 %v2541_v32, %v107_v33  ;;  %v2542_v32 = vld.sshfl [vmem:[%s3845_s4] sm:$0x11 pattern:$0x75316420] }
 0x145   :  { %v128_v30 = vunpack.c.0.s8 %v127_v29 }
 0x146   :  { %v162_v37 = vpack.c.bf16 %v3292_v35, %v3290_v34 }
 0x147   :  { %v131_v31 = vsub.s32 %v128_v30, %v3328_v46 }
 0x148   :  { %2555 = vmatmul.mubr.msk.bf16.vlgmr.msra.gmra.mxu0 %vm72_vm0, %v162_v37 }
 0x149   :  { %314 = vmatpush1.bf16.msra.mxu0 %v2998_v36  ;;  %333 = vmatprep.mubr.bf16.mxu0 %v3144_v15  ;;  %v132_v33 = vrot.slane %v2542_v32, %v131_v31  ;;  %v125_v36 = vcombine.high %v2542_v32, %v2542_v32 }
 0x14a   :  { %315 = vmatprep.subr.bf16.mxu0 %v3003_v38 }
 0x14b   :  { %v139_v38 = vrot.slane %v125_v36, %v131_v31 }
 0x14d   :  { %316 = vmatpush1.bf16.msra.mxu0 %v3001_v39  ;;  %v3385_v45 = vrot.slane %v139_v38, %v3340_v53 }
 0x14e   :  { %356 = vmatprep.subr.bf16.mxu0 %v3006_v40 }
 0x150   :  { %2556 = vmatmul.mubr.msk.bf16.vlgmr.msra.gmra.mxu0 %vm72_vm0, %v162_v37 }
 0x151   :  { %357 = vmatpush1.bf16.msra.mxu0 %v3004_v41  ;;  %376 = vmatprep.mubr.bf16.mxu0 %v3144_v15 }
 0x152   :  { %358 = vmatprep.subr.bf16.mxu0 %v3009_v42 }
 0x155   :  { %359 = vmatpush1.bf16.msra.mxu0 %v3007_v43 }
 0x156   :  { %2830 = vmatprep.subr.bf16.mxu0 %v3145_v44 }
 0x158   :  { %2557 = vmatmul.mubr.msk.bf16.vlgmr.msra.gmra.mxu0 %vm72_vm0, %v162_v37  ;;  %v3379_v37 = vrot.slane %v132_v33, %v3340_v53 }
 0x159   :  { %2832 = vmatprep.mubr.msk.bf16.mxu0 %vm3146_vm1, %v3145_v44 }
 0x208   :  { %v292_v47 = vpop.f32.mrf.mxu0 }
 0x209   :  { %v293_v1 = vadd.f32 %v292_v47, %v168_v58 }
 0x20a   :  { %v294_v49 = vpop.f32.mrf.mxu0 }
 0x20b   :  { %v387_v8 = vpack.c.bf16 %v293_v1, %v293_v1  ;;  %v295_v17 = vadd.f32 %v294_v49, %v172_v9 }
 0x20c   :  { %v296_v51 = vpop.f32.mrf.mxu0 }
 0x20d   :  { %v297_v10 = vadd.f32 %v296_v51, %v168_v58  ;;  %v389_v22 = vpack.c.bf16 %v295_v17, %v295_v17 }
 0x20e   :  { %v298_v54 = vpop.f32.mrf.mxu0 }
 0x20f   :  { %v388_v18 = vpack.c.bf16 %v297_v10, %v297_v10  ;;  %v299_v23 = vadd.f32 %v298_v54, %v172_v9 }
 0x210   :  { %v335_v56 = vpop.f32.mrf.mxu0 }
 0x211   :  { %v336_v57 = vadd.f32 %v335_v56, %v176_v52  ;;  %v390_v26 = vpack.c.bf16 %v299_v23, %v299_v23 }
 0x212   :  { %v337_v59 = vpop.f32.mrf.mxu0 }
 0x213   :  { %v391_v60 = vpack.c.bf16 %v336_v57, %v336_v57  ;;  %v338_v4 = vadd.f32 %v337_v59, %v180_v61 }
 0x214   :  { %v339_v62 = vpop.f32.mrf.mxu0 }
 0x215   :  { %v340_v0 = vadd.f32 %v339_v62, %v176_v52  ;;  %2825 = vmatpush3.bf16.xpose.msra.mxu1 %v391_v60  ;;  %v393_v12 = vpack.c.bf16 %v338_v4, %v338_v4 }
 0x216   :  { %v341_v3 = vpop.f32.mrf.mxu0  ;;  %2836 = vmatprep.subr.bf16.mxu1 %v3145_v44 }
 0x217   :  { %v392_v5 = vpack.c.bf16 %v340_v0, %v340_v0  ;;  %v342_v13 = vadd.f32 %v341_v3, %v180_v61 }
 0x218   :  { %v378_v7 = vpop.f32.mrf.mxu0 }
 0x219   :  { %2831 = vmatpush3.bf16.xpose.msra.mxu0 %v392_v5  ;;  %v379_v14 = vadd.f32 %v378_v7, %v184_v6  ;;  %v394_v19 = vpack.c.bf16 %v342_v13, %v342_v13 }
 0x21a   :  { %v3357_v11 = vpop.f32.mrf.mxu0  ;;  %2842 = vmatprep.subr.bf16.mxu0 %v3145_v44 }
 0x21b   :  { %v612_v20 = vpack.c.bf16 %v379_v14, %v379_v14 }
 0x21c   :  { %2827 = vmatmul.mubr.bf16.vlgmr.msra.gmra.mxu1 %v387_v8  ;;  %v382_v16 = vpop.f32.mrf.mxu0 }
 0x21d   :  { %2837 = vmatpush3.bf16.xpose.msra.mxu1 %v393_v12  ;;  %2838 = vmatprep.mubr.msk.bf16.mxu1 %vm3146_vm1, %v3145_v44  ;;  %v383_v21 = vadd.f32 %v382_v16, %v184_v6  ;;  %v621_v24 = vsel %vm619_vm2, %v612_v20, 0 }
 0x21e   :  { %2848 = vmatprep.subr.bf16.mxu1 %v3145_v44  ;;  %v3381_v41 = vpop.f32.mrf.mxu0 }
 0x21f   :  { %v613_v25 = vpack.c.bf16 %v383_v21, %v383_v21 }
 0x220   :  { %2833 = vmatmul.mubr.bf16.vlgmr.msra.gmra.mxu0 %v388_v18 }
 0x221   :  { %2843 = vmatpush3.bf16.xpose.msra.mxu0 %v394_v19  ;;  %2844 = vmatprep.mubr.msk.bf16.mxu0 %vm3146_vm1, %v3145_v44  ;;  %v667_v27 = vsel %vm619_vm2, %v613_v25, 0 }
 0x222   :  { %2854 = vmatprep.subr.bf16.mxu0 %v3145_v44 }
 0x224   :  { %2839 = vmatmul.mubr.bf16.vlgmr.msra.gmra.mxu1 %v389_v22 }
 0x225   :  { %2849 = vmatpush3.bf16.msra.mxu1 %v621_v24  ;;  %2850 = vmatprep.mubr.msk.bf16.mxu1 %vm3146_vm1, %v3145_v44 }
 0x226   :  { %2860 = vmatprep.subr.bf16.mxu1 %v3145_v44 }
 0x228   :  { %2845 = vmatmul.mubr.bf16.vlgmr.msra.gmra.mxu0 %v390_v26 }
 0x229   :  { %2855 = vmatpush3.bf16.msra.mxu0 %v667_v27  ;;  %2856 = vmatprep.mubr.msk.bf16.mxu0 %vm3146_vm1, %v3145_v44 }
 0x22a   :  { %2866 = vmatprep.subr.bf16.mxu0 %v3145_v44 }
 0x2dc   :  { %v429_v39 = vpop.f32.mrf.mxu1 }
 0x2dd   :  { %v555_v40 = vmul.f32 0.25, %v429_v39  ;;  %v187_v39 = vsub.s32 5, %v3328_v46 }
 0x2de   :  { %v2828_v42 = vpop.f32.mrf.mxu1 }
 0x2df   :  { %v559_v43 = vadd.f32 %v555_v40, %v3379_v37  ;;  %v188_v42 = vrot.slane %v3334_v50, %v187_v39 }
 0x2e0   :  { %v432_v47 = vpop.f32.mrf.mxu1  ;;  %v469_v49 = vpop.f32.mrf.mxu0 }
 0x2e1   :  { %v556_v51 = vmul.f32 0.25, %v469_v49  ;;  %v564_v52 = vsel %vm563_vm3, %v559_v43, -inf  ;;  %v381_v47 = vadd.f32 %v3357_v11, %v188_v42 }
 0x2e2   :  { %v2834_v54 = vpop.f32.mrf.mxu0  ;;  %565 = vmax.xlane.f32.xlu0 %v564_v52  ;;  %v2829_v56 = vpop.f32.mrf.mxu1 }
 0x2e3   :  { %v560_v57 = vadd.f32 %v556_v51, %v3385_v45  ;;  %v614_v52 = vpack.c.bf16 %v381_v47, %v381_v47  ;;  %v385_v54 = vadd.f32 %v3381_v41, %v188_v42 }
 0x2e4   :  { %v472_v58 = vpop.f32.mrf.mxu0  ;;  %v509_v59 = vpop.f32.mrf.mxu1 }
 0x2e5   :  { %v557_v60 = vmul.f32 0.25, %v509_v59  ;;  %v567_v61 = vsel %vm563_vm3, %v560_v57, -inf  ;;  %v3010_v58 = vld [vmem:[%s3815_s6 + $0x78] sm:$0xff]   ;;  %v615_v50 = vpack.c.bf16 %v385_v54, %v385_v54 }
 0x2e6   :  { %568 = vmax.xlane.f32.xlu1 %v567_v61  ;;  %v2835_v62 = vpop.f32.mrf.mxu0  ;;  %v2840_v0 = vpop.f32.mrf.mxu1 }
 0x2e7   :  { %v561_v1 = vadd.f32 %v557_v60, %v3379_v37  ;;  %v713_v60 = vsel %vm619_vm2, %v614_v52, 0  ;;  %v759_v62 = vsel %vm619_vm2, %v615_v50, 0  ;;  %v2562_v52 = vld [vmem:[%s3816_s7] ss:$0 sm:$0xff] }
 0x2e8   :  { %v512_v3 = vpop.f32.mrf.mxu1  ;;  %v549_v4 = vpop.f32.mrf.mxu0 }
 0x2e9   :  { %v558_v5 = vmul.f32 0.25, %v549_v4  ;;  %v570_v6 = vsel %vm563_vm3, %v561_v1, -inf  ;;  %v3012_v4 = vld [vmem:[%s3815_s6 + $0x70] sm:$0xff]  }
 0x2ea   :  { %v2846_v7 = vpop.f32.mrf.mxu0  ;;  %571 = vmax.xlane.f32.xlu0 %v570_v6  ;;  %v2841_v8 = vpop.f32.mrf.mxu1 }
 0x2eb   :  { %v562_v9 = vadd.f32 %v558_v5, %v3385_v45  ;;  %v3013_v7 = vld [vmem:[%s3815_s6 + $0x30] sm:$0xff]  }
 0x2ec   :  { %v552_v10 = vpop.f32.mrf.mxu0 }
 0x2ed   :  { %v573_v12 = vsel %vm563_vm3, %v562_v9, -inf  ;;  %v3015_v10 = vld [vmem:[%s3815_s6 + $0x28] sm:$0xff]  }
 0x2ee   :  { %574 = vmax.xlane.f32.xlu1 %v573_v12  ;;  %v2847_v13 = vpop.f32.mrf.mxu0  ;;  %v3016_v12 = vld [vmem:[%s3815_s6 + $0x60] sm:$0xff]  }
 0x2ef   :  { %v3017_v13 = vld [vmem:[%s3815_s6 + $0x20] sm:$0xff]  }
 0x36b   :  { %v566_v14 = vpop.xlane.xlu0 %565 }
 0x36c   :  { %v576_v16 = vsub.f32 %v559_v43, %v566_v14  ;;  %v3018_v14 = vld [vmem:[%s3815_s6 + $0x58] sm:$0xff]  }
 0x36e   :  { %v580_v17 = vmul.f32 1.442695, %v576_v16  ;;  %v3019_v16 = vld [vmem:[%s3815_s6 + $0x18] sm:$0xff]  }
 0x36f   :  { %v569_v18 = vpop.xlane.xlu1 %568 }
 0x370   :  { %3086 = vpow2.f32 %v580_v17  ;;  %v577_v19 = vsub.f32 %v560_v57, %v569_v18  ;;  %v3020_v17 = vld [vmem:[%s3815_s6 + $0x50] sm:$0xff]  }
 0x371   :  { %v3021_v18 = vld [vmem:[%s3815_s6 + $0x10] sm:$0xff]  }
 0x372   :  { %v582_v20 = vmul.f32 1.442695, %v577_v19  ;;  %v3022_v19 = vld [vmem:[%s3815_s6 + $0x48] sm:$0xff]  }
 0x373   :  { %v572_v21 = vpop.xlane.xlu0 %571 }
 0x374   :  { %3088 = vpow2.f32 %v582_v20  ;;  %v578_v22 = vsub.f32 %v561_v1, %v572_v21  ;;  %v3011_v1 = vld [vmem:[%s3815_s6 + $0x38] sm:$0xff]   ;;  %v3023_v20 = vld [vmem:[%s3815_s6 + $0x8] sm:$0xff]   ;;  %v3024_v21 = vld [vmem:[%s3815_s6 + $0x40] sm:$0xff]  }
 0x376   :  { %v584_v23 = vmul.f32 1.442695, %v578_v22  ;;  %v3025_v22 = vld [vmem:[%s3815_s6] sm:$0xff]  }
 0x377   :  { %v575_v24 = vpop.xlane.xlu1 %574 }
 0x378   :  { %3090 = vpow2.f32 %v584_v23  ;;  %v579_v25 = vsub.f32 %v562_v9, %v575_v24  ;;  %v3014_v9 = vld [vmem:[%s3815_s6 + $0x68] sm:$0xff]  }
 0x37a   :  { %v586_v26 = vmul.f32 1.442695, %v579_v25 }
 0x37c   :  { %3092 = vpow2.f32 %v586_v26 }
 0x37d   :  { %v3087_v27 = vpop.eup %3086 }
 0x37e   :  { %v588_v28 = vsel %vm563_vm3, %v3087_v27, 0.0 }
 0x37f   :  { %589 = vadd.xlane.f32.xlu0 %v588_v28 }
 0x381   :  { %v3089_v29 = vpop.eup %3088 }
 0x382   :  { %v591_v30 = vsel %vm563_vm3, %v3089_v29, 0.0 }
 0x383   :  { %592 = vadd.xlane.f32.xlu1 %v591_v30 }
 0x385   :  { %v3091_v31 = vpop.eup %3090 }
 0x386   :  { %v594_v32 = vsel %vm563_vm3, %v3091_v31, 0.0 }
 0x387   :  { %595 = vadd.xlane.f32.xlu0 %v594_v32 }
 0x389   :  { %v3093_v33 = vpop.eup %3092 }
 0x38a   :  { %v597_v36 = vsel %vm563_vm3, %v3093_v33, 0.0 }
 0x38b   :  { %598 = vadd.xlane.f32.xlu1 %v597_v36 }
 0x408   :  { %v590_v38 = vpop.xlane.xlu0 %589 }
 0x409   :  { %3094 = vrcp.f32 %v590_v38 }
 0x40c   :  { %v593_v40 = vpop.xlane.xlu1 %592 }
 0x40d   :  { %3096 = vrcp.f32 %v593_v40 }
 0x410   :  { %v596_v43 = vpop.xlane.xlu0 %595 }
 0x411   :  { %3098 = vrcp.f32 %v596_v43 }
 0x414   :  { %v599_v49 = vpop.xlane.xlu1 %598 }
 0x415   :  { %3100 = vrcp.f32 %v599_v49 }
 0x416   :  { %v3095_v51 = vpop.eup %3094 }
 0x417   :  { %v604_v56 = vmul.f32 %v3095_v51, %v3087_v27 }
 0x419   :  { %v608_v57 = vpack.c.bf16 %v604_v56, %v604_v56 }
 0x41a   :  { %v3097_v59 = vpop.eup %3096 }
 0x41b   :  { %2851 = vmatmul.mubr.msk.bf16.vlgmr.msra.gmra.mxu1 %vm563_vm3, %v608_v57  ;;  %v605_v61 = vmul.f32 %v3097_v59, %v3089_v29 }
 0x41c   :  { %2861 = vmatpush3.bf16.msra.mxu1 %v713_v60  ;;  %2862 = vmatprep.mubr.msk.bf16.mxu1 %vm3146_vm1, %v3145_v44 }
 0x41d   :  { %v609_v11 = vpack.c.bf16 %v605_v61, %v605_v61  ;;  %2736 = vmatprep.subr.bf16.mxu1 %v3010_v58 }
 0x41e   :  { %v3099_v41 = vpop.eup %3098 }
 0x41f   :  { %2857 = vmatmul.mubr.msk.bf16.vlgmr.msra.gmra.mxu0 %vm563_vm3, %v609_v11  ;;  %v606_v0 = vmul.f32 %v3099_v41, %v3091_v31 }
 0x420   :  { %2867 = vmatpush3.bf16.msra.mxu0 %v759_v62  ;;  %2868 = vmatprep.mubr.msk.bf16.mxu0 %vm3146_vm1, %v3145_v44 }
 0x421   :  { %v610_v3 = vpack.c.bf16 %v606_v0, %v606_v0  ;;  %2872 = vmatprep.subr.bf16.mxu0 %v3145_v44 }
 0x422   :  { %v3101_v5 = vpop.eup %3100 }
 0x423   :  { %2863 = vmatmul.mubr.msk.bf16.vlgmr.msra.gmra.mxu1 %vm563_vm3, %v610_v3  ;;  %v607_v6 = vmul.f32 %v3101_v5, %v3093_v33 }
 0x424   :  { %2737 = vmatpush3.bf16.msra.mxu1 %v3011_v1 }
 0x425   :  { %v611_v8 = vpack.c.bf16 %v607_v6, %v607_v6  ;;  %2738 = vmatprep.subr.bf16.mxu1 %v3012_v4 }
 0x427   :  { %2869 = vmatmul.mubr.msk.bf16.vlgmr.msra.gmra.mxu0 %vm563_vm3, %v611_v8 }
 0x428   :  { %2739 = vmatpush3.bf16.msra.mxu1 %v3013_v7  ;;  %2876 = vmatprep.mubr.msk.bf16.mxu0 %vm3146_vm1, %v3145_v44 }
 0x429   :  { %2740 = vmatprep.subr.bf16.mxu1 %v3014_v9 }
 0x42c   :  { %2741 = vmatpush3.bf16.msra.mxu1 %v3015_v10  ;;  %v3027_v10 = vld [vmem:[%s3817_s10] sm:$0xff]  }
 0x42d   :  { %2742 = vmatprep.subr.bf16.mxu1 %v3016_v12 }
 0x430   :  { %2743 = vmatpush3.bf16.msra.mxu1 %v3017_v13 }
 0x431   :  { %2744 = vmatprep.subr.bf16.mxu1 %v3018_v14 }
 0x434   :  { %2745 = vmatpush3.bf16.msra.mxu1 %v3019_v16 }
 0x435   :  { %2746 = vmatprep.subr.bf16.mxu1 %v3020_v17 }
 0x438   :  { %2747 = vmatpush3.bf16.msra.mxu1 %v3021_v18 }
 0x439   :  { %2748 = vmatprep.subr.bf16.mxu1 %v3022_v19 }
 0x43c   :  { %2749 = vmatpush3.bf16.msra.mxu1 %v3023_v20 }
 0x43d   :  { %2750 = vmatprep.subr.bf16.mxu1 %v3024_v21  ;;  %v2579_v21 = vld [vmem:[%s3818_s8] ss:$0 sm:$0xff] }
 0x440   :  { %2751 = vmatpush3.bf16.msra.mxu1 %v3025_v22 }
 0x4db   :  { %v657_v23 = vpop.f32.mrf.mxu1 }
 0x4dd   :  { %v2852_v24 = vpop.f32.mrf.mxu1 }
 0x4df   :  { %v660_v25 = vpop.f32.mrf.mxu1  ;;  %v703_v26 = vpop.f32.mrf.mxu0 }
 0x4e0   :  { %v833_v40 = vpack.c.bf16 %v703_v26, %v657_v23  ;;  %v2580_v25 = vld [vmem:[%s3819_s9] ss:$0 sm:$0xff] }
 0x4e1   :  { %v2853_v27 = vpop.f32.mrf.mxu1  ;;  %v2858_v28 = vpop.f32.mrf.mxu0 }
 0x4e3   :  { %v706_v29 = vpop.f32.mrf.mxu0  ;;  %v749_v30 = vpop.f32.mrf.mxu1 }
 0x4e5   :  { %v2859_v31 = vpop.f32.mrf.mxu0  ;;  %v2864_v32 = vpop.f32.mrf.mxu1 }
 0x4e6   :  { %v3029_v31 = vld [vmem:[%s3820_s12 + $0x10] sm:$0xff]   ;;  %v3030_v32 = vld [vmem:[%s3820_s12 + $0x8] sm:$0xff]  }
 0x4e7   :  { %v752_v33 = vpop.f32.mrf.mxu1  ;;  %v795_v36 = vpop.f32.mrf.mxu0 }
 0x4e8   :  { %v834_v38 = vpack.c.bf16 %v795_v36, %v749_v30  ;;  %v3028_v30 = vld [vmem:[%s3820_s12 + $0x18] sm:$0xff]   ;;  %v3031_v33 = vld [vmem:[%s3820_s12] sm:$0xff]  }
 0x4e9   :  { %v2865_v42 = vpop.f32.mrf.mxu1  ;;  %v2870_v43 = vpop.f32.mrf.mxu0  ;;  %v2581_v36 = vld [vmem:[%s3821_s11] ss:$0 sm:$0xff] }
 0x4ea   :  { %970 = vmatprep.mubr.bf16.mxu1 %v834_v38 }
 0x4eb   :  { %v798_v47 = vpop.f32.mrf.mxu0  ;;  %971 = vmatmul.mubr.bf16.vlgmr.msra.gmra.mxu1 %v833_v40 }
 0x4ec   :  { %1427 = vmatprep.mubr.bf16.mxu1 %v3144_v15 }
 0x4ed   :  { %v2871_v49 = vpop.f32.mrf.mxu0 }
 0x5ab   :  { %v2752_v51 = vpop.f32.mrf.mxu1 }
 0x5ad   :  { %v2753_v54 = vpop.f32.mrf.mxu1 }
 0x5ae   :  { %v2754_v56 = vadd.f32 %v2753_v54, %v2752_v51 }
 0x5af   :  { %v2755_v57 = vpop.f32.mrf.mxu1 }
 0x5b0   :  { %v973_v58 = vadd.f32 %v2754_v56, %v2562_v52 }
 0x5b1   :  { %v2756_v59 = vpop.f32.mrf.mxu1 }
 0x5b2   :  { %v2757_v60 = vadd.f32 %v2756_v59, %v2755_v57  ;;  %v979_v50 = vadd.f32 %v973_v58, %v3290_v34 }
 0x5b4   :  { %v976_v61 = vadd.f32 %v2757_v60, %v2562_v52  ;;  %v983_v11 = vsel %vm72_vm0, %v979_v50, 0.0 }
 0x5b5   :  { %984 = vadd.xlane.f32.xlu0 %v983_v11 }
 0x5b6   :  { %v980_v41 = vadd.f32 %v976_v61, %v3292_v35  ;;  %v3026_v35 = vld [vmem:[%s3817_s10 + $0x8] sm:$0xff]  }
 0x5b7   :  { %2873 = vmatpush3.bf16.msra.mxu0 %v3026_v35 }
 0x5b8   :  { %v986_v62 = vsel %vm72_vm0, %v980_v41, 0.0  ;;  %2874 = vmatprep.subr.bf16.mxu0 %v3145_v44 }
 0x5b9   :  { %987 = vadd.xlane.f32.xlu1 %v986_v62 }
 0x5bb   :  { %2875 = vmatpush3.bf16.msra.mxu0 %v3027_v10 }
 0x5bc   :  { %2880 = vmatprep.subr.bf16.mxu0 %v3145_v44 }
 0x63e   :  { %v985_v0 = vpop.xlane.xlu0 %984 }
 0x63f   :  { %v989_v1 = vmul.f32 0.03125, %v985_v0 }
 0x641   :  { %v991_v3 = vsub.f32 %v979_v50, %v989_v1 }
 0x642   :  { %v988_v4 = vpop.xlane.xlu1 %987 }
 0x643   :  { %v990_v5 = vmul.f32 0.03125, %v988_v4  ;;  %v993_v6 = vmul.f32 %v991_v3, %v991_v3 }
 0x645   :  { %v992_v7 = vsub.f32 %v980_v41, %v990_v5  ;;  %v995_v8 = vsel %vm72_vm0, %v993_v6, 0.0 }
 0x646   :  { %996 = vadd.xlane.f32.xlu0 %v995_v8 }
 0x647   :  { %v994_v34 = vmul.f32 %v992_v7, %v992_v7 }
 0x649   :  { %v998_v9 = vsel %vm72_vm0, %v994_v34, 0.0 }
 0x64a   :  { %999 = vadd.xlane.f32.xlu1 %v998_v9 }
 0x6cf   :  { %v997_v12 = vpop.xlane.xlu0 %996 }
 0x6d0   :  { %v1001_v13 = vmul.f32 0.03125, %v997_v12 }
 0x6d2   :  { %v1003_v14 = vadd.f32 1e-12, %v1001_v13 }
 0x6d3   :  { %v1000_v16 = vpop.xlane.xlu1 %999 }
 0x6d4   :  { %3102 = vrsqrt.f32 %v1003_v14  ;;  %v1002_v17 = vmul.f32 0.03125, %v1000_v16 }
 0x6d6   :  { %v1004_v18 = vadd.f32 1e-12, %v1002_v17 }
 0x6d8   :  { %3104 = vrsqrt.f32 %v1004_v18 }
 0x6e1   :  { %v3103_v19 = vpop.eup %3102 }
 0x6e2   :  { %v1007_v20 = vmul.f32 %v3103_v19, %v991_v3 }
 0x6e4   :  { %v1015_v24 = vmul.f32 %v2579_v21, %v1007_v20 }
 0x6e5   :  { %v3105_v22 = vpop.eup %3104 }
 0x6e6   :  { %v1008_v23 = vmul.f32 %v3105_v22, %v992_v7  ;;  %v1023_v27 = vadd.f32 %v2580_v25, %v1015_v24  ;;  %v2585_v7 = vld [vmem:[%s3822_s13] ss:$0 sm:$0xff] }
 0x6e8   :  { %v1016_v26 = vmul.f32 %v2579_v21, %v1008_v23 }
 0x6ea   :  { %v1024_v28 = vadd.f32 %v2580_v25, %v1016_v26 }
 0x6ec   :  { %v1029_v29 = vpack.c.bf16 %v1024_v28, %v1023_v27 }
 0x6ee   :  { %2877 = vmatmul.mubr.msk.bf16.vlgmr.msra.gmra.mxu0 %vm72_vm0, %v1029_v29  ;;  %v3037_v29 = vld [vmem:[%s3841_s0 + $0x9c] ss:$24 sps:$4 sm:$0xff]  }
 0x6ef   :  { %2888 = vmatprep.mubr.msk.bf16.mxu0 %vm3146_vm1, %v3145_v44  ;;  %2881 = vmatpush3.bf16.msra.mxu0 %v3028_v30  ;;  %v3032_v30 = vld [vmem:[%s3841_s0 + $0x90] ss:$24 sps:$4 sm:$0xff]  }
 0x6f0   :  { %2882 = vmatprep.subr.bf16.mxu0 %v3145_v44  ;;  %1407 = vmatprep.subr.bf16.mxu1 %v3037_v29 }
 0x6f3   :  { %2883 = vmatpush3.bf16.msra.mxu0 %v3029_v31  ;;  %v3035_v31 = vld [vmem:[%s3841_s0 + $0x98] ss:$24 sps:$4 sm:$0xff]  }
 0x6f4   :  { %2884 = vmatprep.subr.bf16.mxu0 %v3145_v44  ;;  %1408 = vmatpush1.bf16.msra.mxu1 %v3035_v31 }
 0x6f7   :  { %2885 = vmatpush3.bf16.msra.mxu0 %v3030_v32  ;;  %v3040_v32 = vld [vmem:[%s3841_s0 + $0x64] ss:$24 sps:$4 sm:$0xff]  }
 0x6f8   :  { %2886 = vmatprep.subr.bf16.mxu0 %v3145_v44 }
 0x6fb   :  { %2887 = vmatpush3.bf16.msra.mxu0 %v3031_v33  ;;  %v3043_v33 = vld [vmem:[%s3841_s0 + $0x6c] ss:$24 sps:$4 sm:$0xff]  }
 0x6fc   :  { %1409 = vmatprep.subr.bf16.mxu1 %v3043_v33 }
 0x7ae   :  { %v1086_v38 = vpop.f32.mrf.mxu0 }
 0x7af   :  { %v1087_v40 = vadd.f32 %v2581_v36, %v1086_v38  ;;  %v3041_v38 = vld [vmem:[%s3841_s0 + $0x68] ss:$24 sps:$4 sm:$0xff]  }
 0x7b0   :  { %v2878_v42 = vpop.f32.mrf.mxu0  ;;  %1410 = vmatpush1.bf16.msra.mxu1 %v3041_v38 }
 0x7b1   :  { %v1093_v43 = vmul.f32 %v1087_v40, %v1087_v40  ;;  %2892 = vmatprep.subr.bf16.mxu1 %v3145_v44 }
 0x7b2   :  { %v1089_v47 = vpop.f32.mrf.mxu0 }
 0x7b3   :  { %v1095_v49 = vmul.f32 %v1093_v43, %v1087_v40  ;;  %v1090_v51 = vadd.f32 %v2581_v36, %v1089_v47  ;;  %v3038_v36 = vld [vmem:[%s3841_s0 + $0x60] ss:$24 sps:$4 sm:$0xff]  }
 0x7b4   :  { %v2879_v52 = vpop.f32.mrf.mxu0 }
 0x7b5   :  { %v1097_v54 = vmul.f32 0.044715, %v1095_v49  ;;  %v1094_v56 = vmul.f32 %v1090_v51, %v1090_v51 }
 0x7b7   :  { %v1099_v57 = vadd.f32 %v1097_v54, %v1087_v40  ;;  %v1096_v58 = vmul.f32 %v1094_v56, %v1090_v51 }
 0x7b9   :  { %v1101_v59 = vmul.f32 0.7978846, %v1099_v57  ;;  %v1098_v60 = vmul.f32 0.044715, %v1096_v58  ;;  %v2591_v57 = vld [vmem:[%s3823_s14] ss:$0 sm:$0xff] }
 0x7bb   :  { %3106 = vtanh.f32 %v1101_v59  ;;  %v1100_v50 = vadd.f32 %v1098_v60, %v1090_v51 }
 0x7bd   :  { %v1102_v61 = vmul.f32 0.7978846, %v1100_v50  ;;  %v2592_v50 = vld [vmem:[%s3824_s15] ss:$0 sm:$0xff] }
 0x7bf   :  { %3108 = vtanh.f32 %v1102_v61 }
 0x7c8   :  { %v3107_v11 = vpop.eup %3106 }
 0x7c9   :  { %v1105_v41 = vadd.f32 1.0, %v3107_v11 }
 0x7cb   :  { %v1107_v0 = vmul.f32 0.5, %v1105_v41 }
 0x7cc   :  { %v3109_v62 = vpop.eup %3108 }
 0x7cd   :  { %v1106_v1 = vadd.f32 1.0, %v3109_v62  ;;  %v1109_v4 = vmul.f32 %v1107_v0, %v1087_v40  ;;  %v3046_v40 = vld [vmem:[%s3841_s0 + $0xa4] ss:$24 sps:$4 sm:$0xff]   ;;  %v3044_v62 = vld [vmem:[%s3841_s0 + $0xa0] ss:$24 sps:$4 sm:$0xff]  }
 0x7cf   :  { %v1108_v3 = vmul.f32 0.5, %v1106_v1  ;;  %v3049_v1 = vld [vmem:[%s3841_s0 + $0x74] ss:$24 sps:$4 sm:$0xff]  }
 0x7d1   :  { %v1110_v5 = vmul.f32 %v1108_v3, %v1090_v51  ;;  %v3047_v3 = vld [vmem:[%s3841_s0 + $0x70] ss:$24 sps:$4 sm:$0xff]  }
 0x7d3   :  { %v1119_v6 = vpack.c.bf16 %v1110_v5, %v1109_v4  ;;  %v3580_v4 = vld [vmem:[%s3844_s1 + $0x6] sm:$0x3f] }
 0x7d5   :  { %2889 = vmatmul.mubr.msk.bf16.vlgmr.msra.gmra.mxu0 %vm1151_vm4, %v1119_v6 }
 0x7d6   :  { %1384 = vmatprep.mubr.bf16.mxu0 %v3144_v15 }
 0x895   :  { %v1189_v8 = vpop.f32.mrf.mxu0 }
 0x896   :  { %v1190_v34 = vadd.f32 %v2585_v7, %v1189_v8  ;;  %v1262_v8 = vrot.slane %v3580_v4, %v3340_v53  ;;  %v1278_v53 = vrot.slane %v3580_v4, %v183_v63 }
 0x897   :  { %v2890_v9 = vpop.f32.mrf.mxu0 }
 0x898   :  { %v1196_v35 = vadd.f32 %v1190_v34, %v1023_v27 }
 0x899   :  { %v1192_v10 = vpop.f32.mrf.mxu0 }
 0x89a   :  { %v1193_v12 = vadd.f32 %v2585_v7, %v1192_v10  ;;  %v1200_v13 = vsel %vm72_vm0, %v1196_v35, 0.0  ;;  %v1274_v10 = vrot.slane %v3580_v4, %v179_v55  ;;  %v1266_v55 = vrot.slane %v3580_v4, %v171_v2 }
 0x89b   :  { %1201 = vadd.xlane.f32.xlu0 %v1200_v13  ;;  %v2891_v14 = vpop.f32.mrf.mxu0 }
 0x89c   :  { %v1197_v16 = vadd.f32 %v1193_v12, %v1024_v28  ;;  %v3034_v28 = vld [vmem:[%s3841_s0 + $0x94] ss:$24 sps:$4 sm:$0xff]  }
 0x89d   :  { %1364 = vmatprep.subr.bf16.mxu0 %v3034_v28 }
 0x89e   :  { %v1203_v17 = vsel %vm72_vm0, %v1197_v16, 0.0  ;;  %1365 = vmatpush1.bf16.msra.mxu0 %v3032_v30 }
 0x89f   :  { %1204 = vadd.xlane.f32.xlu1 %v1203_v17  ;;  %1366 = vmatprep.subr.bf16.mxu0 %v3040_v32 }
 0x8a2   :  { %1367 = vmatpush1.bf16.msra.mxu0 %v3038_v36 }
 0x8a3   :  { %1450 = vmatprep.subr.bf16.mxu0 %v3046_v40 }
 0x924   :  { %v1202_v18 = vpop.xlane.xlu0 %1201 }
 0x925   :  { %v1206_v19 = vmul.f32 0.03125, %v1202_v18 }
 0x927   :  { %v1208_v20 = vsub.f32 %v1196_v35, %v1206_v19 }
 0x928   :  { %v1205_v21 = vpop.xlane.xlu1 %1204 }
 0x929   :  { %v1207_v22 = vmul.f32 0.03125, %v1205_v21  ;;  %v1210_v23 = vmul.f32 %v1208_v20, %v1208_v20 }
 0x92b   :  { %v1209_v24 = vsub.f32 %v1197_v16, %v1207_v22  ;;  %v1212_v25 = vsel %vm72_vm0, %v1210_v23, 0.0 }
 0x92c   :  { %1213 = vadd.xlane.f32.xlu0 %v1212_v25 }
 0x92d   :  { %v1211_v26 = vmul.f32 %v1209_v24, %v1209_v24 }
 0x92f   :  { %v1215_v27 = vsel %vm72_vm0, %v1211_v26, 0.0 }
 0x930   :  { %1216 = vadd.xlane.f32.xlu1 %v1215_v27 }
 0x9b5   :  { %v1214_v42 = vpop.xlane.xlu0 %1213 }
 0x9b6   :  { %v1218_v43 = vmul.f32 0.03125, %v1214_v42 }
 0x9b8   :  { %v1220_v47 = vadd.f32 1e-12, %v1218_v43 }
 0x9b9   :  { %v1217_v49 = vpop.xlane.xlu1 %1216 }
 0x9ba   :  { %3110 = vrsqrt.f32 %v1220_v47  ;;  %v1219_v51 = vmul.f32 0.03125, %v1217_v49 }
 0x9bc   :  { %v1221_v52 = vadd.f32 1e-12, %v1219_v51 }
 0x9be   :  { %3112 = vrsqrt.f32 %v1221_v52 }
 0x9c7   :  { %v3111_v54 = vpop.eup %3110 }
 0x9c8   :  { %v1224_v56 = vmul.f32 %v3111_v54, %v1208_v20 }
 0x9ca   :  { %v1232_v60 = vmul.f32 %v2591_v57, %v1224_v56 }
 0x9cb   :  { %v3113_v58 = vpop.eup %3112 }
 0x9cc   :  { %v1225_v59 = vmul.f32 %v3113_v58, %v1209_v24  ;;  %v3553_v11 = vadd.f32 %v2592_v50, %v1232_v60 }
 0x9ce   :  { %v1233_v61 = vmul.f32 %v2591_v57, %v1225_v59 }
 0x9d0   :  { %v3555_v41 = vadd.f32 %v2592_v50, %v1233_v61 }
 0x9d2   :  { %v1255_v0 = vpack.c.bf16 %v3555_v41, %v3553_v11 }
 0x9d4   :  { %2618 = vmatmul.mubr.msk.bf16.vlgmr.msra.gmra.mxu0 %vm72_vm0, %v1255_v0  ;;  %2619 = vmatmul.mubr.msk.bf16.vlgmr.msra.gmra.mxu1 %vm72_vm0, %v1255_v0 }
 0x9d5   :  { %1451 = vmatpush1.bf16.msra.mxu0 %v3044_v62  ;;  %1470 = vmatprep.mubr.bf16.mxu0 %v3144_v15  ;;  %v1270_v15 = vrot.slane %v3580_v4, %v175_v48 }
 0x9d6   :  { %1452 = vmatprep.subr.bf16.mxu0 %v3049_v1  ;;  %2894 = vmatprep.mubr.msk.bf16.mxu1 %vm3146_vm1, %v3145_v44 }
 0x9d9   :  { %1453 = vmatpush1.bf16.msra.mxu0 %v3047_v3 }
 0x9da   :  { %2898 = vmatprep.subr.bf16.mxu0 %v3145_v44 }
 0x9dc   :  { %2620 = vmatmul.mubr.msk.bf16.vlgmr.msra.gmra.mxu0 %vm72_vm0, %v1255_v0 }
 0x9dd   :  { %2900 = vmatprep.mubr.msk.bf16.mxu0 %vm3146_vm1, %v3145_v44 }
 0xa94   :  { %v1386_v5 = vpop.f32.mrf.mxu0  ;;  %v1429_v6 = vpop.f32.mrf.mxu1 }
 0xa95   :  { %v1430_v7 = vadd.f32 %v1429_v6, %v1270_v15  ;;  %v1387_v16 = vadd.f32 %v1386_v5, %v1262_v8 }
 0xa96   :  { %v1388_v34 = vpop.f32.mrf.mxu0  ;;  %v1431_v9 = vpop.f32.mrf.mxu1 }
 0xa97   :  { %v1485_v35 = vpack.c.bf16 %v1430_v7, %v1430_v7  ;;  %v1432_v48 = vadd.f32 %v1431_v9, %v1274_v10  ;;  %v1481_v21 = vpack.c.bf16 %v1387_v16, %v1387_v16  ;;  %v1389_v63 = vadd.f32 %v1388_v34, %v1266_v55 }
 0xa98   :  { %v1390_v12 = vpop.f32.mrf.mxu0  ;;  %v1433_v13 = vpop.f32.mrf.mxu1 }
 0xa99   :  { %v1434_v14 = vadd.f32 %v1433_v13, %v1270_v15  ;;  %2893 = vmatpush3.bf16.xpose.msra.mxu1 %v1485_v35  ;;  %v1391_v22 = vadd.f32 %v1390_v12, %v1262_v8  ;;  %v1487_v24 = vpack.c.bf16 %v1432_v48, %v1432_v48  ;;  %v1483_v31 = vpack.c.bf16 %v1389_v63, %v1389_v63 }
 0xa9a   :  { %v1392_v17 = vpop.f32.mrf.mxu0  ;;  %2904 = vmatprep.subr.bf16.mxu1 %v3145_v44  ;;  %v1435_v19 = vpop.f32.mrf.mxu1 }
 0xa9b   :  { %v1486_v18 = vpack.c.bf16 %v1434_v14, %v1434_v14  ;;  %v1436_v25 = vadd.f32 %v1435_v19, %v1274_v10  ;;  %v1482_v28 = vpack.c.bf16 %v1391_v22, %v1391_v22  ;;  %v1393_v32 = vadd.f32 %v1392_v17, %v1266_v55 }
 0xa9c   :  { %v1472_v20 = vpop.f32.mrf.mxu0 }
 0xa9d   :  { %2899 = vmatpush3.bf16.xpose.msra.mxu0 %v1486_v18  ;;  %v1473_v26 = vadd.f32 %v1472_v20, %v1278_v53  ;;  %v1488_v29 = vpack.c.bf16 %v1436_v25, %v1436_v25  ;;  %v1484_v38 = vpack.c.bf16 %v1393_v32, %v1393_v32 }
 0xa9e   :  { %v3597_v23 = vpop.f32.mrf.mxu0  ;;  %2910 = vmatprep.subr.bf16.mxu0 %v3145_v44 }
 0xa9f   :  { %v1705_v2 = vpack.c.bf16 %v1473_v26, %v1473_v26 }
 0xaa0   :  { %2895 = vmatmul.mubr.bf16.vlgmr.msra.gmra.mxu1 %v1481_v21  ;;  %v1476_v27 = vpop.f32.mrf.mxu0 }
 0xaa1   :  { %2905 = vmatpush3.bf16.xpose.msra.mxu1 %v1487_v24  ;;  %2906 = vmatprep.mubr.msk.bf16.mxu1 %vm3146_vm1, %v3145_v44  ;;  %v1477_v30 = vadd.f32 %v1476_v27, %v1278_v53  ;;  %v1713_v33 = vsel %vm619_vm2, %v1705_v2, 0 }
 0xaa2   :  { %2916 = vmatprep.subr.bf16.mxu1 %v3145_v44  ;;  %v3614_v47 = vpop.f32.mrf.mxu0 }
 0xaa3   :  { %v1706_v36 = vpack.c.bf16 %v1477_v30, %v1477_v30 }
 0xaa4   :  { %2901 = vmatmul.mubr.bf16.vlgmr.msra.gmra.mxu0 %v1482_v28 }
 0xaa5   :  { %2911 = vmatpush3.bf16.xpose.msra.mxu0 %v1488_v29  ;;  %2912 = vmatprep.mubr.msk.bf16.mxu0 %vm3146_vm1, %v3145_v44  ;;  %v1759_v40 = vsel %vm619_vm2, %v1706_v36, 0 }
 0xaa6   :  { %2922 = vmatprep.subr.bf16.mxu0 %v3145_v44 }
 0xaa8   :  { %2907 = vmatmul.mubr.bf16.vlgmr.msra.gmra.mxu1 %v1483_v31  ;;  %v1282_v31 = vrot.slane %v3580_v4, %v187_v39 }
 0xaa9   :  { %2917 = vmatpush3.bf16.msra.mxu1 %v1713_v33  ;;  %2918 = vmatprep.mubr.msk.bf16.mxu1 %vm3146_vm1, %v3145_v44 }
 0xaaa   :  { %2928 = vmatprep.subr.bf16.mxu1 %v3145_v44  ;;  %v1475_v33 = vadd.f32 %v3597_v23, %v1282_v31 }
 0xaac   :  { %2913 = vmatmul.mubr.bf16.vlgmr.msra.gmra.mxu0 %v1484_v38 }
 0xaad   :  { %2923 = vmatpush3.bf16.msra.mxu0 %v1759_v40  ;;  %2924 = vmatprep.mubr.msk.bf16.mxu0 %vm3146_vm1, %v3145_v44  ;;  %v1707_v40 = vpack.c.bf16 %v1475_v33, %v1475_v33 }
 0xaae   :  { %2934 = vmatprep.subr.bf16.mxu0 %v3145_v44 }
 0xaaf   :  { %v1805_v46 = vsel %vm619_vm2, %v1707_v40, 0 }
 0xb60   :  { %v1523_v42 = vpop.f32.mrf.mxu1 }
 0xb61   :  { %v1649_v43 = vmul.f32 0.25, %v1523_v42  ;;  %v1479_v42 = vadd.f32 %v3614_v47, %v1282_v31 }
 0xb62   :  { %v2896_v49 = vpop.f32.mrf.mxu1 }
 0xb63   :  { %v1653_v51 = vadd.f32 %v1649_v43, %v3379_v37  ;;  %v1708_v39 = vpack.c.bf16 %v1479_v42, %v1479_v42 }
 0xb64   :  { %v1526_v52 = vpop.f32.mrf.mxu1  ;;  %v1563_v54 = vpop.f32.mrf.mxu0 }
 0xb65   :  { %v1650_v56 = vmul.f32 0.25, %v1563_v54  ;;  %v1657_v57 = vsel %vm563_vm3, %v1653_v51, -inf  ;;  %v1851_v54 = vsel %vm619_vm2, %v1708_v39, 0 }
 0xb66   :  { %v2902_v58 = vpop.f32.mrf.mxu0  ;;  %1658 = vmax.xlane.f32.xlu0 %v1657_v57  ;;  %v2897_v59 = vpop.f32.mrf.mxu1  ;;  %v3051_v57 = vld [vmem:[%s3815_s6 + $0xb8] sm:$0xff]  }
 0xb67   :  { %v1654_v60 = vadd.f32 %v1650_v56, %v3385_v45  ;;  %v3052_v59 = vld [vmem:[%s3815_s6 + $0xf0] sm:$0xff]  }
 0xb68   :  { %v1566_v50 = vpop.f32.mrf.mxu0  ;;  %v1603_v61 = vpop.f32.mrf.mxu1 }
 0xb69   :  { %v1651_v62 = vmul.f32 0.25, %v1603_v61  ;;  %v1660_v0 = vsel %vm563_vm3, %v1654_v60, -inf  ;;  %v3053_v61 = vld [vmem:[%s3815_s6 + $0xb0] sm:$0xff]  }
 0xb6a   :  { %1661 = vmax.xlane.f32.xlu1 %v1660_v0  ;;  %v2903_v1 = vpop.f32.mrf.mxu0  ;;  %v2908_v3 = vpop.f32.mrf.mxu1  ;;  %v3054_v0 = vld [vmem:[%s3815_s6 + $0xe8] sm:$0xff]  }
 0xb6b   :  { %v1655_v15 = vadd.f32 %v1651_v62, %v3379_v37  ;;  %v3055_v1 = vld [vmem:[%s3815_s6 + $0xa8] sm:$0xff]   ;;  %v3056_v3 = vld [vmem:[%s3815_s6 + $0xe0] sm:$0xff]  }
 0xb6c   :  { %v1606_v5 = vpop.f32.mrf.mxu1  ;;  %v1643_v6 = vpop.f32.mrf.mxu0 }
 0xb6d   :  { %v1652_v7 = vmul.f32 0.25, %v1643_v6  ;;  %v1663_v8 = vsel %vm563_vm3, %v1655_v15, -inf  ;;  %v3058_v5 = vld [vmem:[%s3815_s6 + $0xd8] sm:$0xff]  }
 0xb6e   :  { %v2914_v34 = vpop.f32.mrf.mxu0  ;;  %1664 = vmax.xlane.f32.xlu0 %v1663_v8  ;;  %v2909_v9 = vpop.f32.mrf.mxu1  ;;  %v3059_v6 = vld [vmem:[%s3815_s6 + $0x98] sm:$0xff]   ;;  %v3061_v8 = vld [vmem:[%s3815_s6 + $0x90] sm:$0xff]  }
 0xb6f   :  { %v1656_v35 = vadd.f32 %v1652_v7, %v3385_v45  ;;  %v3060_v7 = vld [vmem:[%s3815_s6 + $0xd0] sm:$0xff]   ;;  %v3062_v34 = vld [vmem:[%s3815_s6 + $0xc8] sm:$0xff]  }
 0xb70   :  { %v1646_v10 = vpop.f32.mrf.mxu0  ;;  %v3063_v9 = vld [vmem:[%s3815_s6 + $0x88] sm:$0xff]  }
 0xb71   :  { %v1666_v12 = vsel %vm563_vm3, %v1656_v35, -inf  ;;  %v3065_v10 = vld [vmem:[%s3815_s6 + $0x80] sm:$0xff]  }
 0xb72   :  { %1667 = vmax.xlane.f32.xlu1 %v1666_v12  ;;  %v2915_v13 = vpop.f32.mrf.mxu0 }
 0xbef   :  { %v1659_v14 = vpop.xlane.xlu0 %1658 }
 0xbf0   :  { %v1669_v16 = vsub.f32 %v1653_v51, %v1659_v14  ;;  %v3050_v51 = vld [vmem:[%s3815_s6 + $0xf8] sm:$0xff]  }
 0xbf2   :  { %v1673_v17 = vmul.f32 1.442695, %v1669_v16 }
 0xbf3   :  { %v1662_v48 = vpop.xlane.xlu1 %1661 }
 0xbf4   :  { %3114 = vpow2.f32 %v1673_v17  ;;  %v1670_v37 = vsub.f32 %v1654_v60, %v1662_v48 }
 0xbf6   :  { %v1675_v18 = vmul.f32 1.442695, %v1670_v37 }
 0xbf7   :  { %v1665_v19 = vpop.xlane.xlu0 %1664 }
 0xbf8   :  { %3116 = vpow2.f32 %v1675_v18  ;;  %v1671_v53 = vsub.f32 %v1655_v15, %v1665_v19  ;;  %v3057_v15 = vld [vmem:[%s3815_s6 + $0xa0] sm:$0xff]  }
 0xbfa   :  { %v1677_v20 = vmul.f32 1.442695, %v1671_v53 }
 0xbfb   :  { %v1668_v21 = vpop.xlane.xlu1 %1667 }
 0xbfc   :  { %3118 = vpow2.f32 %v1677_v20  ;;  %v1672_v55 = vsub.f32 %v1656_v35, %v1668_v21  ;;  %v3064_v35 = vld [vmem:[%s3815_s6 + $0xc0] sm:$0xff]  }
 0xbfe   :  { %v1679_v45 = vmul.f32 1.442695, %v1672_v55 }
 0xc00   :  { %3120 = vpow2.f32 %v1679_v45 }
 0xc01   :  { %v3115_v22 = vpop.eup %3114 }
 0xc02   :  { %v1681_v24 = vsel %vm563_vm3, %v3115_v22, 0.0 }
 0xc03   :  { %1682 = vadd.xlane.f32.xlu0 %v1681_v24 }
 0xc05   :  { %v3117_v25 = vpop.eup %3116 }
 0xc06   :  { %v1684_v26 = vsel %vm563_vm3, %v3117_v25, 0.0 }
 0xc07   :  { %1685 = vadd.xlane.f32.xlu1 %v1684_v26 }
 0xc09   :  { %v3119_v27 = vpop.eup %3118 }
 0xc0a   :  { %v1687_v63 = vsel %vm563_vm3, %v3119_v27, 0.0 }
 0xc0b   :  { %1688 = vadd.xlane.f32.xlu0 %v1687_v63  ;;  %v2658_v63 = vld [vmem:[%s3816_s7 + $0x1] ss:$0 sm:$0xff] }
 0xc0d   :  { %v3121_v28 = vpop.eup %3120 }
 0xc0e   :  { %v1690_v29 = vsel %vm563_vm3, %v3121_v28, 0.0 }
 0xc0f   :  { %1691 = vadd.xlane.f32.xlu1 %v1690_v29 }
 0xc8c   :  { %v1683_v2 = vpop.xlane.xlu0 %1682 }
 0xc8d   :  { %3122 = vrcp.f32 %v1683_v2 }
 0xc90   :  { %v1686_v30 = vpop.xlane.xlu1 %1685 }
 0xc91   :  { %3124 = vrcp.f32 %v1686_v30 }
 0xc94   :  { %v1689_v32 = vpop.xlane.xlu0 %1688 }
 0xc95   :  { %3126 = vrcp.f32 %v1689_v32 }
 0xc98   :  { %v1692_v36 = vpop.xlane.xlu1 %1691 }
 0xc99   :  { %3128 = vrcp.f32 %v1692_v36 }
 0xc9a   :  { %v3123_v38 = vpop.eup %3122 }
 0xc9b   :  { %v1697_v43 = vmul.f32 %v3123_v38, %v3115_v22 }
 0xc9d   :  { %v1701_v49 = vpack.c.bf16 %v1697_v43, %v1697_v43 }
 0xc9e   :  { %v3125_v52 = vpop.eup %3124 }
 0xc9f   :  { %2919 = vmatmul.mubr.msk.bf16.vlgmr.msra.gmra.mxu1 %vm563_vm3, %v1701_v49  ;;  %v1698_v4 = vmul.f32 %v3125_v52, %v3117_v25 }
 0xca0   :  { %2929 = vmatpush3.bf16.msra.mxu1 %v1805_v46  ;;  %2930 = vmatprep.mubr.msk.bf16.mxu1 %vm3146_vm1, %v3145_v44 }
 0xca1   :  { %v1702_v23 = vpack.c.bf16 %v1698_v4, %v1698_v4  ;;  %2782 = vmatprep.subr.bf16.mxu1 %v3050_v51 }
 0xca2   :  { %v3127_v47 = vpop.eup %3126 }
 0xca3   :  { %2925 = vmatmul.mubr.msk.bf16.vlgmr.msra.gmra.mxu0 %vm563_vm3, %v1702_v23  ;;  %v1699_v56 = vmul.f32 %v3127_v47, %v3119_v27 }
 0xca4   :  { %2935 = vmatpush3.bf16.msra.mxu0 %v1851_v54  ;;  %2936 = vmatprep.mubr.msk.bf16.mxu0 %vm3146_vm1, %v3145_v44  ;;  %v3067_v54 = vld [vmem:[%s3817_s10 + $0x10] sm:$0xff]  }
 0xca5   :  { %v1703_v58 = vpack.c.bf16 %v1699_v56, %v1699_v56  ;;  %2940 = vmatprep.subr.bf16.mxu0 %v3145_v44 }
 0xca6   :  { %v3129_v60 = vpop.eup %3128 }
 0xca7   :  { %2931 = vmatmul.mubr.msk.bf16.vlgmr.msra.gmra.mxu1 %vm563_vm3, %v1703_v58  ;;  %v1700_v50 = vmul.f32 %v3129_v60, %v3121_v28 }
 0xca8   :  { %2783 = vmatpush3.bf16.msra.mxu1 %v3051_v57 }
 0xca9   :  { %v1704_v62 = vpack.c.bf16 %v1700_v50, %v1700_v50  ;;  %2784 = vmatprep.subr.bf16.mxu1 %v3052_v59 }
 0xcab   :  { %2937 = vmatmul.mubr.msk.bf16.vlgmr.msra.gmra.mxu0 %vm563_vm3, %v1704_v62 }
 0xcac   :  { %2785 = vmatpush3.bf16.msra.mxu1 %v3053_v61  ;;  %2944 = vmatprep.mubr.msk.bf16.mxu0 %vm3146_vm1, %v3145_v44 }
 0xcad   :  { %2786 = vmatprep.subr.bf16.mxu1 %v3054_v0  ;;  %v2677_v0 = vld [vmem:[%s3818_s8 + $0x1] ss:$0 sm:$0xff] }
 0xcb0   :  { %2787 = vmatpush3.bf16.msra.mxu1 %v3055_v1 }
 0xcb1   :  { %2788 = vmatprep.subr.bf16.mxu1 %v3056_v3 }
 0xcb4   :  { %2789 = vmatpush3.bf16.msra.mxu1 %v3057_v15 }
 0xcb5   :  { %2790 = vmatprep.subr.bf16.mxu1 %v3058_v5  ;;  %v2678_v5 = vld [vmem:[%s3819_s9 + $0x1] ss:$0 sm:$0xff] }
 0xcb8   :  { %2791 = vmatpush3.bf16.msra.mxu1 %v3059_v6 }
 0xcb9   :  { %2792 = vmatprep.subr.bf16.mxu1 %v3060_v7 }
 0xcbc   :  { %2793 = vmatpush3.bf16.msra.mxu1 %v3061_v8 }
 0xcbd   :  { %2794 = vmatprep.subr.bf16.mxu1 %v3062_v34 }
 0xcc0   :  { %2795 = vmatpush3.bf16.msra.mxu1 %v3063_v9  ;;  %v3068_v9 = vld [vmem:[%s3820_s12 + $0x38] sm:$0xff]  }
 0xcc1   :  { %2796 = vmatprep.subr.bf16.mxu1 %v3064_v35  ;;  %v3069_v35 = vld [vmem:[%s3820_s12 + $0x30] sm:$0xff]  }
 0xcc4   :  { %2797 = vmatpush3.bf16.msra.mxu1 %v3065_v10  ;;  %v3070_v10 = vld [vmem:[%s3820_s12 + $0x28] sm:$0xff]  }
 0xcc5   :  { %2968 = vmatprep.subr.bf16.mxu1 %v3145_v44 }
 0xd5f   :  { %v1749_v12 = vpop.f32.mrf.mxu1 }
 0xd61   :  { %v2920_v13 = vpop.f32.mrf.mxu1 }
 0xd62   :  { %v2684_v13 = vld [vmem:[%s3821_s11 + $0x1] ss:$0 sm:$0xff] }
 0xd63   :  { %v1752_v14 = vpop.f32.mrf.mxu1  ;;  %v1795_v16 = vpop.f32.mrf.mxu0 }
 0xd64   :  { %v1926_v45 = vpack.c.bf16 %v1795_v16, %v1749_v12  ;;  %v3071_v12 = vld [vmem:[%s3820_s12 + $0x20] sm:$0xff]  }
 0xd65   :  { %v2921_v17 = vpop.f32.mrf.mxu1  ;;  %v2926_v48 = vpop.f32.mrf.mxu0 }
 0xd67   :  { %v1798_v37 = vpop.f32.mrf.mxu0  ;;  %v1841_v18 = vpop.f32.mrf.mxu1 }
 0xd69   :  { %v2927_v19 = vpop.f32.mrf.mxu0  ;;  %v2932_v53 = vpop.f32.mrf.mxu1 }
 0xd6b   :  { %v1844_v20 = vpop.f32.mrf.mxu1  ;;  %v1887_v21 = vpop.f32.mrf.mxu0 }
 0xd6c   :  { %v1927_v55 = vpack.c.bf16 %v1887_v21, %v1841_v18 }
 0xd6d   :  { %v2933_v22 = vpop.f32.mrf.mxu1  ;;  %v2938_v24 = vpop.f32.mrf.mxu0 }
 0xd6e   :  { %2064 = vmatprep.mubr.bf16.mxu1 %v1927_v55 }
 0xd6f   :  { %v1890_v25 = vpop.f32.mrf.mxu0  ;;  %2065 = vmatmul.mubr.bf16.vlgmr.msra.gmra.mxu1 %v1926_v45 }
 0xd70   :  { %2984 = vmatprep.mubr.msk.bf16.mxu1 %vm3146_vm1, %v3145_v44 }
 0xd71   :  { %v2939_v26 = vpop.f32.mrf.mxu0 }
 0xe2f   :  { %v2798_v27 = vpop.f32.mrf.mxu1 }
 0xe31   :  { %v2799_v28 = vpop.f32.mrf.mxu1 }
 0xe32   :  { %v2800_v29 = vadd.f32 %v2799_v28, %v2798_v27 }
 0xe33   :  { %v2801_v2 = vpop.f32.mrf.mxu1 }
 0xe34   :  { %v2067_v30 = vadd.f32 %v2800_v29, %v2658_v63 }
 0xe35   :  { %v2802_v31 = vpop.f32.mrf.mxu1 }
 0xe36   :  { %v2803_v32 = vadd.f32 %v2802_v31, %v2801_v2  ;;  %v2073_v33 = vadd.f32 %v2067_v30, %v3553_v11 }
 0xe38   :  { %v2070_v36 = vadd.f32 %v2803_v32, %v2658_v63  ;;  %v2079_v38 = vsel %vm72_vm0, %v2073_v33, 0.0 }
 0xe39   :  { %2080 = vadd.xlane.f32.xlu0 %v2079_v38 }
 0xe3a   :  { %v2074_v40 = vadd.f32 %v2070_v36, %v3555_v41  ;;  %v3066_v41 = vld [vmem:[%s3817_s10 + $0x18] sm:$0xff]   ;;  %v2697_v36 = vld [vmem:[%s3822_s13 + $0x1] ss:$0 sm:$0xff] }
 0xe3b   :  { %2941 = vmatpush3.bf16.msra.mxu0 %v3066_v41 }
 0xe3c   :  { %v2082_v42 = vsel %vm72_vm0, %v2074_v40, 0.0  ;;  %2942 = vmatprep.subr.bf16.mxu0 %v3145_v44 }
 0xe3d   :  { %2083 = vadd.xlane.f32.xlu1 %v2082_v42 }
 0xe3f   :  { %2943 = vmatpush3.bf16.msra.mxu0 %v3067_v54 }
 0xe40   :  { %2948 = vmatprep.subr.bf16.mxu0 %v3145_v44 }
 0xec2   :  { %v2081_v43 = vpop.xlane.xlu0 %2080 }
 0xec3   :  { %v2085_v49 = vmul.f32 0.03125, %v2081_v43 }
 0xec5   :  { %v2087_v51 = vsub.f32 %v2073_v33, %v2085_v49 }
 0xec6   :  { %v2084_v52 = vpop.xlane.xlu1 %2083 }
 0xec7   :  { %v2086_v46 = vmul.f32 0.03125, %v2084_v52  ;;  %v2089_v39 = vmul.f32 %v2087_v51, %v2087_v51 }
 0xec9   :  { %v2088_v4 = vsub.f32 %v2074_v40, %v2086_v46  ;;  %v2091_v23 = vsel %vm72_vm0, %v2089_v39, 0.0 }
 0xeca   :  { %2092 = vadd.xlane.f32.xlu0 %v2091_v23 }
 0xecb   :  { %v2090_v11 = vmul.f32 %v2088_v4, %v2088_v4 }
 0xecd   :  { %v2094_v47 = vsel %vm72_vm0, %v2090_v11, 0.0 }
 0xece   :  { %2095 = vadd.xlane.f32.xlu1 %v2094_v47 }
 0xf53   :  { %v2093_v56 = vpop.xlane.xlu0 %2092 }
 0xf54   :  { %v2097_v57 = vmul.f32 0.03125, %v2093_v56 }
 0xf56   :  { %v2099_v58 = vadd.f32 1e-12, %v2097_v57 }
 0xf57   :  { %v2096_v59 = vpop.xlane.xlu1 %2095 }
 0xf58   :  { %3130 = vrsqrt.f32 %v2099_v58  ;;  %v2098_v60 = vmul.f32 0.03125, %v2096_v59 }
 0xf5a   :  { %v2100_v50 = vadd.f32 1e-12, %v2098_v60 }
 0xf5c   :  { %3132 = vrsqrt.f32 %v2100_v50  ;;  %v3072_v50 = vld [vmem:[%s3825_s16 + $0x8] sm:$0xff]  }
 0xf65   :  { %v3131_v61 = vpop.eup %3130 }
 0xf66   :  { %v2103_v62 = vmul.f32 %v3131_v61, %v2087_v51  ;;  %v3073_v61 = vld [vmem:[%s3825_s16] sm:$0xff]  }
 0xf68   :  { %v2111_v15 = vmul.f32 %v2677_v0, %v2103_v62  ;;  %v3074_v62 = vld [vmem:[%s3826_s18 + $0x38] sm:$0xff]  }
 0xf69   :  { %v3133_v1 = vpop.eup %3132  ;;  %2969 = vmatpush3.bf16.msra.mxu1 %v3074_v62 }
 0xf6a   :  { %v2104_v3 = vmul.f32 %v3133_v1, %v2088_v4  ;;  %v2119_v7 = vadd.f32 %v2678_v5, %v2111_v15  ;;  %2970 = vmatprep.subr.bf16.mxu1 %v3145_v44  ;;  %v3076_v1 = vld [vmem:[%s3826_s18 + $0x28] sm:$0xff]  }
 0xf6c   :  { %v2112_v6 = vmul.f32 %v2677_v0, %v2104_v3  ;;  %v3075_v0 = vld [vmem:[%s3826_s18 + $0x30] sm:$0xff]  }
 0xf6d   :  { %2971 = vmatpush3.bf16.msra.mxu1 %v3075_v0 }
 0xf6e   :  { %v2120_v8 = vadd.f32 %v2678_v5, %v2112_v6  ;;  %2972 = vmatprep.subr.bf16.mxu1 %v3145_v44 }
 0xf70   :  { %v2126_v34 = vpack.c.bf16 %v2120_v8, %v2119_v7 }
 0xf71   :  { %2973 = vmatpush3.bf16.msra.mxu1 %v3076_v1 }
 0xf72   :  { %2945 = vmatmul.mubr.msk.bf16.vlgmr.msra.gmra.mxu0 %vm72_vm0, %v2126_v34  ;;  %2974 = vmatprep.subr.bf16.mxu1 %v3145_v44 }
 0xf73   :  { %2956 = vmatprep.mubr.msk.bf16.mxu0 %vm3146_vm1, %v3145_v44  ;;  %2949 = vmatpush3.bf16.msra.mxu0 %v3068_v9 }
 0xf74   :  { %2950 = vmatprep.subr.bf16.mxu0 %v3145_v44 }
 0xf77   :  { %2951 = vmatpush3.bf16.msra.mxu0 %v3069_v35 }
 0xf78   :  { %2952 = vmatprep.subr.bf16.mxu0 %v3145_v44 }
 0xf7b   :  { %2953 = vmatpush3.bf16.msra.mxu0 %v3070_v10  ;;  %v2705_v10 = vld [vmem:[%s3823_s14 + $0x1] ss:$0 sm:$0xff] }
 0xf7c   :  { %2954 = vmatprep.subr.bf16.mxu0 %v3145_v44 }
 0xf7f   :  { %2955 = vmatpush3.bf16.msra.mxu0 %v3071_v12 }
 0xf80   :  { %2960 = vmatprep.subr.bf16.mxu0 %v3145_v44 }
0x1032   :  { %v2184_v14 = vpop.f32.mrf.mxu0 }
0x1033   :  { %v2185_v16 = vadd.f32 %v2684_v13, %v2184_v14 }
0x1034   :  { %v2946_v17 = vpop.f32.mrf.mxu0 }
0x1035   :  { %v2191_v48 = vmul.f32 %v2185_v16, %v2185_v16 }
0x1036   :  { %v2187_v37 = vpop.f32.mrf.mxu0 }
0x1037   :  { %v2193_v18 = vmul.f32 %v2191_v48, %v2185_v16  ;;  %v2188_v19 = vadd.f32 %v2684_v13, %v2187_v37 }
0x1038   :  { %v2947_v53 = vpop.f32.mrf.mxu0 }
0x1039   :  { %v2195_v20 = vmul.f32 0.044715, %v2193_v18  ;;  %v2192_v21 = vmul.f32 %v2188_v19, %v2188_v19 }
0x103b   :  { %v2197_v55 = vadd.f32 %v2195_v20, %v2185_v16  ;;  %v2194_v45 = vmul.f32 %v2192_v21, %v2188_v19  ;;  %v3077_v20 = vld [vmem:[%s3826_s18 + $0x20] sm:$0xff]   ;;  %v3078_v21 = vld [vmem:[%s3826_s18 + $0x18] sm:$0xff]  }
0x103c   :  { %2975 = vmatpush3.bf16.msra.mxu1 %v3077_v20 }
0x103d   :  { %v2199_v22 = vmul.f32 0.7978846, %v2197_v55  ;;  %v2196_v24 = vmul.f32 0.044715, %v2194_v45  ;;  %2976 = vmatprep.subr.bf16.mxu1 %v3145_v44  ;;  %v3079_v55 = vld [vmem:[%s3826_s18 + $0x10] sm:$0xff]   ;;  %v3080_v45 = vld [vmem:[%s3826_s18 + $0x8] sm:$0xff]  }
0x103f   :  { %3134 = vtanh.f32 %v2199_v22  ;;  %v2198_v25 = vadd.f32 %v2196_v24, %v2188_v19  ;;  %v3081_v22 = vld [vmem:[%s3826_s18] sm:$0xff]  }
0x1040   :  { %2977 = vmatpush3.bf16.msra.mxu1 %v3078_v21  ;;  %v2707_v24 = vld [vmem:[%s3827_s17] ss:$0 sm:$0xff] }
0x1041   :  { %v2200_v26 = vmul.f32 0.7978846, %v2198_v25  ;;  %2978 = vmatprep.subr.bf16.mxu1 %v3145_v44 }
0x1043   :  { %3136 = vtanh.f32 %v2200_v26 }
0x1044   :  { %2979 = vmatpush3.bf16.msra.mxu1 %v3079_v55 }
0x1045   :  { %2980 = vmatprep.subr.bf16.mxu1 %v3145_v44 }
0x1048   :  { %2981 = vmatpush3.bf16.msra.mxu1 %v3080_v45 }
0x1049   :  { %2982 = vmatprep.subr.bf16.mxu1 %v3145_v44 }
0x104c   :  { %v3135_v27 = vpop.eup %3134  ;;  %2983 = vmatpush3.bf16.msra.mxu1 %v3081_v22 }
0x104d   :  { %v2203_v63 = vadd.f32 1.0, %v3135_v27 }
0x104f   :  { %v2205_v29 = vmul.f32 0.5, %v2203_v63 }
0x1050   :  { %v3137_v28 = vpop.eup %3136 }
0x1051   :  { %v2204_v2 = vadd.f32 1.0, %v3137_v28  ;;  %v2207_v31 = vmul.f32 %v2205_v29, %v2185_v16  ;;  %v2706_v16 = vld [vmem:[%s3824_s15 + $0x1] ss:$0 sm:$0xff] }
0x1053   :  { %v2206_v30 = vmul.f32 0.5, %v2204_v2  ;;  %v2711_v2 = vld [vmem:[%s3829_s19] ss:$0 sm:$0xff] }
0x1055   :  { %v2208_v32 = vmul.f32 %v2206_v30, %v2188_v19 }
0x1057   :  { %v2218_v33 = vpack.c.bf16 %v2208_v32, %v2207_v31 }
0x1059   :  { %2957 = vmatmul.mubr.msk.bf16.vlgmr.msra.gmra.mxu0 %vm1151_vm4, %v2218_v33 }
0x105a   :  { %2964 = vmatprep.mubr.msk.bf16.mxu0 %vm3146_vm1, %v3145_v44  ;;  %2961 = vmatpush3.bf16.msra.mxu0 %v3072_v50 }
0x105b   :  { %2962 = vmatprep.subr.bf16.mxu0 %v3145_v44 }
0x105e   :  { %2963 = vmatpush3.bf16.msra.mxu0 %v3073_v61 }
0x1119   :  { %v2288_v38 = vpop.f32.mrf.mxu0 }
0x111a   :  { %v2289_v40 = vadd.f32 %v2697_v36, %v2288_v38 }
0x111b   :  { %v2958_v42 = vpop.f32.mrf.mxu0 }
0x111c   :  { %v2295_v43 = vadd.f32 %v2289_v40, %v2119_v7 }
0x111d   :  { %v2291_v49 = vpop.f32.mrf.mxu0 }
0x111e   :  { %v2292_v51 = vadd.f32 %v2697_v36, %v2291_v49  ;;  %v2301_v52 = vsel %vm72_vm0, %v2295_v43, 0.0 }
0x111f   :  { %2302 = vadd.xlane.f32.xlu1 %v2301_v52  ;;  %v2959_v46 = vpop.f32.mrf.mxu0 }
0x1120   :  { %v2296_v39 = vadd.f32 %v2292_v51, %v2120_v8 }
0x1122   :  { %v2304_v4 = vsel %vm72_vm0, %v2296_v39, 0.0 }
0x1123   :  { %2305 = vadd.xlane.f32.xlu0 %v2304_v4 }
0x11a8   :  { %v2303_v23 = vpop.xlane.xlu1 %2302 }
0x11a9   :  { %v2307_v11 = vmul.f32 0.03125, %v2303_v23 }
0x11ab   :  { %v2309_v47 = vsub.f32 %v2295_v43, %v2307_v11 }
0x11ac   :  { %v2306_v41 = vpop.xlane.xlu0 %2305 }
0x11ad   :  { %v2308_v54 = vmul.f32 0.03125, %v2306_v41  ;;  %v2311_v56 = vmul.f32 %v2309_v47, %v2309_v47 }
0x11af   :  { %v2310_v57 = vsub.f32 %v2296_v39, %v2308_v54  ;;  %v2313_v58 = vsel %vm72_vm0, %v2311_v56, 0.0 }
0x11b0   :  { %2314 = vadd.xlane.f32.xlu1 %v2313_v58 }
0x11b1   :  { %v2312_v59 = vmul.f32 %v2310_v57, %v2310_v57 }
0x11b3   :  { %v2316_v60 = vsel %vm72_vm0, %v2312_v59, 0.0 }
0x11b4   :  { %2317 = vadd.xlane.f32.xlu0 %v2316_v60 }
0x1239   :  { %v2315_v3 = vpop.xlane.xlu1 %2314 }
0x123a   :  { %v2319_v15 = vmul.f32 0.03125, %v2315_v3 }
0x123c   :  { %v2321_v5 = vadd.f32 1e-12, %v2319_v15 }
0x123d   :  { %v2318_v6 = vpop.xlane.xlu0 %2317 }
0x123e   :  { %3138 = vrsqrt.f32 %v2321_v5  ;;  %v2320_v7 = vmul.f32 0.03125, %v2318_v6 }
0x1240   :  { %v2322_v8 = vadd.f32 1e-12, %v2320_v7 }
0x1242   :  { %3140 = vrsqrt.f32 %v2322_v8 }
0x124b   :  { %v3139_v34 = vpop.eup %3138 }
0x124c   :  { %v2325_v9 = vmul.f32 %v3139_v34, %v2309_v47 }
0x124e   :  { %v2333_v13 = vmul.f32 %v2705_v10, %v2325_v9 }
0x124f   :  { %v3141_v35 = vpop.eup %3140 }
0x1250   :  { %v2326_v12 = vmul.f32 %v3141_v35, %v2310_v57  ;;  %v2341_v48 = vadd.f32 %v2706_v16, %v2333_v13 }
0x1252   :  { %v2334_v14 = vmul.f32 %v2705_v10, %v2326_v12 }
0x1254   :  { %v2342_v17 = vadd.f32 %v2706_v16, %v2334_v14 }
0x1256   :  { %v2344_v37 = vrot.slane %v2342_v17, 7 }
0x1258   :  { %v2347_v18 = vsel %vm2346_vm5, %v2341_v48, %v2344_v37 }
0x1259   :  { %v2349_v19 = vsel %vm2348_vm6, %v2347_v18, 0.0 }
0x125a   :  { %v2354_v53 = vpack.c.bf16 %v2349_v19, %v2349_v19 }
0x125c   :  { %2965 = vmatmul.mubr.msk.bf16.vlgmr.msra.gmra.mxu0 %vm72_vm0, %v2354_v53 }
0x131c   :  { %v2411_v25 = vpop.f32.mrf.mxu0 }
0x131d   :  { %v2412_v26 = vadd.f32 %v2707_v24, %v2411_v25 }
0x131e   :  { %v2966_v27 = vpop.f32.mrf.mxu0 }
0x131f   :  { %3142 = vtanh.f32 %v2412_v26 }
0x1320   :  { %v2414_v63 = vpop.f32.mrf.mxu0 }
0x1322   :  { %v2967_v28 = vpop.f32.mrf.mxu0 }
0x132c   :  { %v3143_v29 = vpop.eup %3142 }
0x132d   :  { %2530 = vst [vmem:[%s3828_s21] sm:$0xff] %v3143_v29  ;;  %v2434_v44 = vpack.c.bf16 %v3143_v29, %v3143_v29 }
0x132f   :  { %2985 = vmatmul.mubr.bf16.vlgmr.msra.gmra.mxu1 %v2434_v44 }
0x13ef   :  { %v2524_v30 = vpop.f32.mrf.mxu1 }
0x13f0   :  { %v2525_v31 = vadd.f32 %v2711_v2, %v2524_v30 }
0x13f1   :  { %v2986_v32 = vpop.f32.mrf.mxu1 }
0x13f2   :  { %2531 = vst [vmem:[%s3830_s20] sm:$0xff] %v2525_v31 }
0x13f3   :  { %v2527_v33 = vpop.f32.mrf.mxu1 }
0x13f5   :  { %v2987_v36 = vpop.f32.mrf.mxu1 }

</bundles_post_ra>
